<compile_context>
chip_gen: v7x
topology: tpu7x:2x2x1
jax: 0.10.0
libtpu: 0.0.40
codegen_flags: <defaults>
</compile_context>

<pallas_src>
import math
import jax
import jax.numpy as jnp
from jax.experimental import pallas as pl
from jax.experimental.pallas import tpu as pltpu


def _fuse_weight(weight, k):
    """Fused weight exactly as the PyTorch module, converted to an equivalent
    standard-conv OIHW weight (transpose in/out + spatial flip), in f32."""
    C_in, C_out, _, _ = weight.shape
    fan_in = C_in * k * k
    multiplier = math.sqrt(2.0 / fan_in)
    wp = jnp.pad(weight.astype(jnp.float32) * multiplier,
                 ((0, 0), (0, 0), (1, 1), (1, 1)))
    w_fused = (wp[:, :, 1:, 1:] + wp[:, :, :-1, 1:]
               + wp[:, :, 1:, :-1] + wp[:, :, :-1, :-1]) / 4.0   # (C_in, C_out, K, K)
    # conv_transpose(x, W, stride, p) == conv(dilate2(x), flip(W^T), pad=K-1-p)
    return jnp.flip(jnp.transpose(w_fused, (1, 0, 2, 3)), axis=(2, 3))  # (C_out, C_in, K, K)


def _make_kernel(C_in, MH, MW, offsets):
    """offsets: 4 phases x T taps of (row, col) offsets into the padded input."""
    L = MH * MW

    def kernel(x_ref, w_ref, b_ref, o_ref):
        # x_ref: (1, C_in, Hp, Wp)   padded input, one batch element (bf16)
        # w_ref: (4, TC, T*C_in)     per-phase im2col weights (bf16)
        # b_ref: (TC, 1)             bias (f32)
        # o_ref: (1, 4, TC, MH*MW)   per-phase lane-dense outputs (f32)
        x = x_ref[0]                 # (C_in, Hp, Wp)
        bias = b_ref[...]            # (TC, 1) f32

        # Extract each distinct tap window once (windows are shared across phases).
        win = {}
        for ph in range(4):
            for off in offsets[ph]:
                if off not in win:
                    ah, aw = off
                    win[off] = x[:, ah:ah + MH, aw:aw + MW].reshape(C_in, L)

        for ph in range(4):
            # im2col slab in VMEM: contraction = T*C_in rows, MH*MW dense lanes.
            slab = jnp.concatenate([win[off] for off in offsets[ph]], axis=0)
            acc = jnp.dot(w_ref[ph], slab, preferred_element_type=jnp.float32)
            o_ref[0, ph] = (acc + bias).astype(o_ref.dtype)

    return kernel


def fused_upsample(x, weight, bias, padding, *, compute_dtype=jnp.bfloat16):
    """Forward pass of FusedUpsample.

    x:      (N, C_in, H, W)      f32
    weight: (C_in, C_out, k, k)  f32  (PyTorch conv_transpose layout)
    bias:   (C_out,)             f32
    """
    N, C_in, H, W = x.shape
    _, C_out, k, _ = weight.shape

    K = k + 1
    pad_amt = K - 1 - padding
    assert pad_amt >= 0, "padding too large for this kernel size"
    # TODO(synk): even kernel_size (odd fused K) needs per-parity tap counts.
    assert K % 2 == 0, "fused kernel size must be even (i.e. odd kernel_size)"

    OH = (H - 1) * 2 - 2 * padding + K
    OW = (W - 1) * 2 - 2 * padding + K
    MH, MW = OH // 2, OW // 2
    T = (K // 2) ** 2
    L = MH * MW

    w_conv = _fuse_weight(weight, k)                     # (C_out, C_in, K, K) f32

    # Per output parity r: taps kh with (oh + kh - pad_amt) even, and the input
    # offset d = (r + kh - pad_amt)//2 they read (stride-2 phase split).
    taps = []
    for r in (0, 1):
        kk = [t for t in range(K) if (t + pad_amt + r) % 2 == 0]
        dd = [(r + t - pad_amt) // 2 for t in kk]
        taps.append((kk, dd))

    d_all = [d for _, dd in taps for d in dd]
    d_min, d_max = min(d_all), max(d_all)
    pad_lo_h, pad_hi_h = max(0, -d_min), max(0, (MH - 1) + d_max - (H - 1))
    pad_lo_w, pad_hi_w = max(0, -d_min), max(0, (MW - 1) + d_max - (W - 1))
    x_pad = jnp.pad(x, ((0, 0), (0, 0), (pad_lo_h, pad_hi_h),
                        (pad_lo_w, pad_hi_w))).astype(compute_dtype)
    Hp, Wp = H + pad_lo_h + pad_hi_h, W + pad_lo_w + pad_hi_w

    # Per-phase im2col weights; row order = (tap-major, channel-minor) to match
    # the slab built inside the kernel.
    w_phases, offsets = [], []
    for r in (0, 1):
        kh_r, dh_r = taps[r]
        for c in (0, 1):
            kw_c, dw_c = taps[c]
            w_sel = w_conv[:, :, kh_r, :][:, :, :, kw_c]        # (C_out, C_in, TH, TW)
            w_phases.append(
                jnp.transpose(w_sel, (0, 2, 3, 1)).reshape(C_out, T * C_in))
            offsets.append(tuple((dh + pad_lo_h, dw + pad_lo_w)
                                 for dh in dh_r for dw in dw_c))
    w_all = jnp.stack(w_phases, axis=0).astype(compute_dtype)   # (4, C_out, T*C_in)
    bias2d = bias.reshape(C_out, 1).astype(jnp.float32)

    # C_out tiling (bounds accumulator / output-block size for large channel counts).
    TC = 128 if (C_out > 128 and C_out % 128 == 0) else C_out
    CT = C_out // TC

    kernel = _make_kernel(C_in, MH, MW, offsets)
    out_ph = pl.pallas_call(
        kernel,
        out_shape=jax.ShapeDtypeStruct((N, 4, C_out, L), jnp.float32),
        grid=(N, CT),
        in_specs=[
            pl.BlockSpec((1, C_in, Hp, Wp), lambda n, ct: (n, 0, 0, 0)),
            pl.BlockSpec((4, TC, T * C_in), lambda n, ct: (0, ct, 0)),
            pl.BlockSpec((TC, 1), lambda n, ct: (ct, 0)),
        ],
        out_specs=pl.BlockSpec((1, 4, TC, L), lambda n, ct: (n, 0, ct, 0)),
        compiler_params=pltpu.CompilerParams(
            dimension_semantics=("parallel", "parallel"),
            vmem_limit_bytes=64 * 1024 * 1024),
    )(x_pad, w_all, bias2d)

    # Interleave the 4 parity phases back into (N, C_out, OH, OW) — wrapper glue.
    out = out_ph.reshape(N, 2, 2, C_out, MH, MW)
    out = jnp.transpose(out, (0, 3, 4, 1, 5, 2)).reshape(N, C_out, OH, OW)
    return out.astype(x.dtype)


def _reference(x, weight, bias, padding, cast_dtype=None):
    """Pure-JAX reference: conv_transpose2d(x, fused_weight, stride=2, padding)."""
    _, _, k, _ = weight.shape
    K = k + 1
    w_conv = _fuse_weight(weight, k)
    if cast_dtype is not None:  # match the kernel's bf16 input/weight cast
        x = x.astype(cast_dtype).astype(jnp.float32)
        w_conv = w_conv.astype(cast_dtype).astype(jnp.float32)
    out = jax.lax.conv_general_dilated(
        x, w_conv,
        window_strides=(1, 1),
        padding=[(K - 1 - padding, K - 1 - padding)] * 2,
        lhs_dilation=(2, 2),
        dimension_numbers=("NCHW", "OIHW", "NCHW"),
        preferred_element_type=jnp.float32)
    return out + bias[None, :, None, None]


if __name__ == "__main__":
    # Module config (small, consistent with the PyTorch __init__ / forward):
    in_channel, out_channel, kernel_size, padding = 4, 8, 3, 1
    N, H, W = 2, 16, 16

    key = jax.random.PRNGKey(0)
    kx, kw = jax.random.split(key)
    x = jax.random.normal(kx, (N, in_channel, H, W), dtype=jnp.float32)
    weight = jax.random.normal(
        kw, (in_channel, out_channel, kernel_size, kernel_size), dtype=jnp.float32)
    bias = jnp.zeros((out_channel,), dtype=jnp.float32)

    out = jax.block_until_ready(fused_upsample(x, weight, bias, padding))
    assert out.shape == (N, out_channel, 2 * H, 2 * W), out.shape

    # Tight check against a reference fed the same bf16-cast inputs
    # (f32 accumulation on both sides -> only summation-order differences).
    ref_bf16 = jax.block_until_ready(
        _reference(x, weight, bias, padding, cast_dtype=jnp.bfloat16))
    err_bf16 = float(jnp.max(jnp.abs(out - ref_bf16)))
    assert jnp.allclose(out, ref_bf16, atol=1e-4, rtol=1e-4), err_bf16

    # Loose sanity check against the full-f32 reference (bf16 input rounding).
    ref_f32 = jax.block_until_ready(_reference(x, weight, bias, padding))
    err_f32 = float(jnp.max(jnp.abs(out - ref_f32)))
    assert jnp.allclose(out, ref_f32, atol=5e-2, rtol=5e-2), err_f32

    print("KERNEL_OK")
</pallas_src>

<mosaic_0001>
module attributes {stable_mosaic.version = 11 : i64} {
  func.func @kernel(%arg0: i32, %arg1: i32, %arg2: memref<1x4x18x18xbf16, #tpu.memory_space<vmem>>, %arg3: memref<4x8x16xbf16, #tpu.memory_space<vmem>>, %arg4: memref<8x1xf32, #tpu.memory_space<vmem>>, %arg5: memref<1x4x8x256xf32, #tpu.memory_space<vmem>>) attributes {dimension_semantics = [#tpu.dimension_semantics<parallel>, #tpu.dimension_semantics<parallel>], iteration_bounds = array<i64: 2, 1>, scalar_prefetch = 0 : i64, scratch_operands = 0 : i64, tpu.core_type = #tpu.core_type<tc>, window_params = [{transform_indices = @transform_0, window_bounds = array<i64: 1, 4, 18, 18>}, {transform_indices = @transform_1, window_bounds = array<i64: 4, 8, 16>}, {transform_indices = @transform_2, window_bounds = array<i64: 8, 1>}, {transform_indices = @transform_3, window_bounds = array<i64: 1, 4, 8, 256>}]} {
    %c0 = arith.constant 0 : index
    %c0_0 = arith.constant 0 : index
    %c0_1 = arith.constant 0 : index
    %c0_2 = arith.constant 0 : index
    %0 = vector.load %arg2[%c0, %c0_0, %c0_1, %c0_2] : memref<1x4x18x18xbf16, #tpu.memory_space<vmem>>, vector<1x4x18x18xbf16>
    %1 = vector.shape_cast %0 : vector<1x4x18x18xbf16> to vector<4x18x18xbf16>
    %c0_3 = arith.constant 0 : index
    %c0_4 = arith.constant 0 : index
    %2 = vector.load %arg4[%c0_3, %c0_4] : memref<8x1xf32, #tpu.memory_space<vmem>>, vector<8x1xf32>
    %3 = vector.extract_strided_slice %1 {offsets = [0, 0, 0], sizes = [4, 16, 16], strides = [1, 1, 1]} : vector<4x18x18xbf16> to vector<4x16x16xbf16>
    %4 = vector.shape_cast %3 : vector<4x16x16xbf16> to vector<4x256xbf16>
    %5 = vector.extract_strided_slice %1 {offsets = [0, 0, 1], sizes = [4, 16, 16], strides = [1, 1, 1]} : vector<4x18x18xbf16> to vector<4x16x16xbf16>
    %6 = vector.shape_cast %5 : vector<4x16x16xbf16> to vector<4x256xbf16>
    %7 = vector.extract_strided_slice %1 {offsets = [0, 1, 0], sizes = [4, 16, 16], strides = [1, 1, 1]} : vector<4x18x18xbf16> to vector<4x16x16xbf16>
    %8 = vector.shape_cast %7 : vector<4x16x16xbf16> to vector<4x256xbf16>
    %9 = vector.extract_strided_slice %1 {offsets = [0, 1, 1], sizes = [4, 16, 16], strides = [1, 1, 1]} : vector<4x18x18xbf16> to vector<4x16x16xbf16>
    %10 = vector.shape_cast %9 : vector<4x16x16xbf16> to vector<4x256xbf16>
    %11 = vector.extract_strided_slice %1 {offsets = [0, 0, 2], sizes = [4, 16, 16], strides = [1, 1, 1]} : vector<4x18x18xbf16> to vector<4x16x16xbf16>
    %12 = vector.shape_cast %11 : vector<4x16x16xbf16> to vector<4x256xbf16>
    %13 = vector.extract_strided_slice %1 {offsets = [0, 1, 2], sizes = [4, 16, 16], strides = [1, 1, 1]} : vector<4x18x18xbf16> to vector<4x16x16xbf16>
    %14 = vector.shape_cast %13 : vector<4x16x16xbf16> to vector<4x256xbf16>
    %15 = vector.extract_strided_slice %1 {offsets = [0, 2, 0], sizes = [4, 16, 16], strides = [1, 1, 1]} : vector<4x18x18xbf16> to vector<4x16x16xbf16>
    %16 = vector.shape_cast %15 : vector<4x16x16xbf16> to vector<4x256xbf16>
    %17 = vector.extract_strided_slice %1 {offsets = [0, 2, 1], sizes = [4, 16, 16], strides = [1, 1, 1]} : vector<4x18x18xbf16> to vector<4x16x16xbf16>
    %18 = vector.shape_cast %17 : vector<4x16x16xbf16> to vector<4x256xbf16>
    %19 = vector.extract_strided_slice %1 {offsets = [0, 2, 2], sizes = [4, 16, 16], strides = [1, 1, 1]} : vector<4x18x18xbf16> to vector<4x16x16xbf16>
    %20 = vector.shape_cast %19 : vector<4x16x16xbf16> to vector<4x256xbf16>
    %21 = tpu.concatenate %4, %6, %8, %10 in 0 : vector<4x256xbf16>, vector<4x256xbf16>, vector<4x256xbf16>, vector<4x256xbf16> -> vector<16x256xbf16>
    %c0_5 = arith.constant 0 : index
    %c0_6 = arith.constant 0 : index
    %c0_7 = arith.constant 0 : index
    %22 = vector.load %arg3[%c0_5, %c0_6, %c0_7] : memref<4x8x16xbf16, #tpu.memory_space<vmem>>, vector<1x8x16xbf16>
    %23 = vector.shape_cast %22 : vector<1x8x16xbf16> to vector<8x16xbf16>
    %cst = arith.constant dense<0.000000e+00> : vector<8x256xf32>
    %24 = tpu.matmul %23, %21, %cst {dimension_numbers = #tpu.dot_dimension_numbers<[1], [0], [0], [1], [0, 0, 1, 1], [], []>} : vector<8x16xbf16>, vector<16x256xbf16>, vector<8x256xf32> -> vector<8x256xf32>
    %25 = vector.broadcast %2 : vector<8x1xf32> to vector<8x256xf32>
    %26 = arith.addf %24, %25 : vector<8x256xf32>
    %c0_8 = arith.constant 0 : index
    %c0_9 = arith.constant 0 : index
    %c0_10 = arith.constant 0 : index
    %c0_11 = arith.constant 0 : index
    %27 = vector.load %arg5[%c0_8, %c0_9, %c0_10, %c0_11] : memref<1x4x8x256xf32, #tpu.memory_space<vmem>>, vector<1x1x8x256xf32>
    %28 = vector.shape_cast %27 : vector<1x1x8x256xf32> to vector<8x256xf32>
    %29 = vector.shape_cast %26 : vector<8x256xf32> to vector<1x1x8x256xf32>
    tpu.vector_store %arg5[%c0_8, %c0_9, %c0_10, %c0_11], %29 {strides = array<i32>} : memref<1x4x8x256xf32, #tpu.memory_space<vmem>>, vector<1x1x8x256xf32>,
    %30 = tpu.concatenate %6, %12, %10, %14 in 0 : vector<4x256xbf16>, vector<4x256xbf16>, vector<4x256xbf16>, vector<4x256xbf16> -> vector<16x256xbf16>
    %c1 = arith.constant 1 : index
    %c0_12 = arith.constant 0 : index
    %c0_13 = arith.constant 0 : index
    %31 = vector.load %arg3[%c1, %c0_12, %c0_13] : memref<4x8x16xbf16, #tpu.memory_space<vmem>>, vector<1x8x16xbf16>
    %32 = vector.shape_cast %31 : vector<1x8x16xbf16> to vector<8x16xbf16>
    %cst_14 = arith.constant dense<0.000000e+00> : vector<8x256xf32>
    %33 = tpu.matmul %32, %30, %cst_14 {dimension_numbers = #tpu.dot_dimension_numbers<[1], [0], [0], [1], [0, 0, 1, 1], [], []>} : vector<8x16xbf16>, vector<16x256xbf16>, vector<8x256xf32> -> vector<8x256xf32>
    %34 = vector.broadcast %2 : vector<8x1xf32> to vector<8x256xf32>
    %35 = arith.addf %33, %34 : vector<8x256xf32>
    %c0_15 = arith.constant 0 : index
    %c1_16 = arith.constant 1 : index
    %c0_17 = arith.constant 0 : index
    %c0_18 = arith.constant 0 : index
    %36 = vector.load %arg5[%c0_15, %c1_16, %c0_17, %c0_18] : memref<1x4x8x256xf32, #tpu.memory_space<vmem>>, vector<1x1x8x256xf32>
    %37 = vector.shape_cast %36 : vector<1x1x8x256xf32> to vector<8x256xf32>
    %38 = vector.shape_cast %35 : vector<8x256xf32> to vector<1x1x8x256xf32>
    tpu.vector_store %arg5[%c0_15, %c1_16, %c0_17, %c0_18], %38 {strides = array<i32>} : memref<1x4x8x256xf32, #tpu.memory_space<vmem>>, vector<1x1x8x256xf32>,
    %39 = tpu.concatenate %8, %10, %16, %18 in 0 : vector<4x256xbf16>, vector<4x256xbf16>, vector<4x256xbf16>, vector<4x256xbf16> -> vector<16x256xbf16>
    %c2 = arith.constant 2 : index
    %c0_19 = arith.constant 0 : index
    %c0_20 = arith.constant 0 : index
    %40 = vector.load %arg3[%c2, %c0_19, %c0_20] : memref<4x8x16xbf16, #tpu.memory_space<vmem>>, vector<1x8x16xbf16>
    %41 = vector.shape_cast %40 : vector<1x8x16xbf16> to vector<8x16xbf16>
    %cst_21 = arith.constant dense<0.000000e+00> : vector<8x256xf32>
    %42 = tpu.matmul %41, %39, %cst_21 {dimension_numbers = #tpu.dot_dimension_numbers<[1], [0], [0], [1], [0, 0, 1, 1], [], []>} : vector<8x16xbf16>, vector<16x256xbf16>, vector<8x256xf32> -> vector<8x256xf32>
    %43 = vector.broadcast %2 : vector<8x1xf32> to vector<8x256xf32>
    %44 = arith.addf %42, %43 : vector<8x256xf32>
    %c0_22 = arith.constant 0 : index
    %c2_23 = arith.constant 2 : index
    %c0_24 = arith.constant 0 : index
    %c0_25 = arith.constant 0 : index
    %45 = vector.load %arg5[%c0_22, %c2_23, %c0_24, %c0_25] : memref<1x4x8x256xf32, #tpu.memory_space<vmem>>, vector<1x1x8x256xf32>
    %46 = vector.shape_cast %45 : vector<1x1x8x256xf32> to vector<8x256xf32>
    %47 = vector.shape_cast %44 : vector<8x256xf32> to vector<1x1x8x256xf32>
    tpu.vector_store %arg5[%c0_22, %c2_23, %c0_24, %c0_25], %47 {strides = array<i32>} : memref<1x4x8x256xf32, #tpu.memory_space<vmem>>, vector<1x1x8x256xf32>,
    %48 = tpu.concatenate %10, %14, %18, %20 in 0 : vector<4x256xbf16>, vector<4x256xbf16>, vector<4x256xbf16>, vector<4x256xbf16> -> vector<16x256xbf16>
    %c3 = arith.constant 3 : index
    %c0_26 = arith.constant 0 : index
    %c0_27 = arith.constant 0 : index
    %49 = vector.load %arg3[%c3, %c0_26, %c0_27] : memref<4x8x16xbf16, #tpu.memory_space<vmem>>, vector<1x8x16xbf16>
    %50 = vector.shape_cast %49 : vector<1x8x16xbf16> to vector<8x16xbf16>
    %cst_28 = arith.constant dense<0.000000e+00> : vector<8x256xf32>
    %51 = tpu.matmul %50, %48, %cst_28 {dimension_numbers = #tpu.dot_dimension_numbers<[1], [0], [0], [1], [0, 0, 1, 1], [], []>} : vector<8x16xbf16>, vector<16x256xbf16>, vector<8x256xf32> -> vector<8x256xf32>
    %52 = vector.broadcast %2 : vector<8x1xf32> to vector<8x256xf32>
    %53 = arith.addf %51, %52 : vector<8x256xf32>
    %c0_29 = arith.constant 0 : index
    %c3_30 = arith.constant 3 : index
    %c0_31 = arith.constant 0 : index
    %c0_32 = arith.constant 0 : index
    %54 = vector.load %arg5[%c0_29, %c3_30, %c0_31, %c0_32] : memref<1x4x8x256xf32, #tpu.memory_space<vmem>>, vector<1x1x8x256xf32>
    %55 = vector.shape_cast %54 : vector<1x1x8x256xf32> to vector<8x256xf32>
    %56 = vector.shape_cast %53 : vector<8x256xf32> to vector<1x1x8x256xf32>
    tpu.vector_store %arg5[%c0_29, %c3_30, %c0_31, %c0_32], %56 {strides = array<i32>} : memref<1x4x8x256xf32, #tpu.memory_space<vmem>>, vector<1x1x8x256xf32>,
    return
  }
  func.func @transform_0(%arg0: i32, %arg1: i32) -> (i32, i32, i32, i32) {
    %c0_i32 = arith.constant 0 : i32
    %c0_i32_0 = arith.constant 0 : i32
    %c0_i32_1 = arith.constant 0 : i32
    %c0_i32_2 = arith.constant 0 : i32
    return %arg0, %c0_i32, %c0_i32_0, %c0_i32_1 : i32, i32, i32, i32
  }
  func.func @transform_1(%arg0: i32, %arg1: i32) -> (i32, i32, i32) {
    %c0_i32 = arith.constant 0 : i32
    %c0_i32_0 = arith.constant 0 : i32
    %c0_i32_1 = arith.constant 0 : i32
    return %c0_i32, %arg1, %c0_i32_0 : i32, i32, i32
  }
  func.func @transform_2(%arg0: i32, %arg1: i32) -> (i32, i32) {
    %c0_i32 = arith.constant 0 : i32
    %c0_i32_0 = arith.constant 0 : i32
    return %arg1, %c0_i32 : i32, i32
  }
  func.func @transform_3(%arg0: i32, %arg1: i32) -> (i32, i32, i32, i32) {
    %c0_i32 = arith.constant 0 : i32
    %c0_i32_0 = arith.constant 0 : i32
    %c0_i32_1 = arith.constant 0 : i32
    return %arg0, %c0_i32, %arg1, %c0_i32_0 : i32, i32, i32, i32
  }
}

</mosaic_0001>

<bundles_post_ra>
// kernel: tpu_custom_call.1
= control target key start
LH: loop header
LB: loop body
LE: loop exit
PB: predicated region body
PF: predicated region fallthrough
CT: control target
= control target key end

     0   :  { %8 = vsyncpa [#allocation3], 0  ;;  %s5949_s0 = inlined_call_operand.hbm [shape: bf16[2,4,18,18], index: 0, kind: input, shape index: {}]   ;;  %s5950_s1 = inlined_call_operand.hbm [shape: bf16[4,8,16], index: 1, kind: input, shape index: {}]   ;;  %s5951_s2 = inlined_call_operand.hbm [shape: f32[8,1], index: 2, kind: input, shape index: {}]   ;;  %s5952_s3 = inlined_call_operand.hbm [shape: f32[2,4,8,256], index: 3, kind: output, shape index: {}]  }
   0x1   :  { %10 = vsyncpa [#allocation3 + $0x1], 0 }
   0x2   :  { %11 = vsyncpa [#allocation6], 0 }
   0x3   :  { %12 = vsyncpa [#allocation4], 0 }
   0x4   :  { %14 = vsyncpa [#allocation4 + $0x1], 0  ;;  %s3792_s12 = smov 0   ;;  %s3794_s13 = smov 0  }
   0x5   :  { %s3796_s14 = smov 0   ;;  %s3798_s15 = smov 0  }
   0x6   :  { %s3800_s16 = smov 0   ;;  %s3802_s17 = smov 0  }
   0x7 LB: > { %s3248_s18 = sadd.s32 4294967295, %s3751_s17   ;;  %s3249_s19 = sadd.s32 4294967294, %s3751_s17   ;;  %s3751_s17 = sphi %s3802_s17, %s20_s17   ;;  %s3747_s16 = sphi %s3800_s16, %s6133_s16   ;;  %s3743_s15 = sphi %s3798_s15, %s6132_s15   ;;  %s3739_s14 = sphi %s3796_s14, %s6131_s14   ;;  %s3735_s13 = sphi %s3794_s13, %s6130_s13   ;;  %s3731_s12 = sphi %s3792_s12, %s6129_s12  }
   0x8   : > { %p52_p0 = scmp.ne.s32.totalorder %s3735_s13, %s3731_s12  ;;  %p3826_p1 = scmp.eq.s32.totalorder %s3248_s18, 0 }
   0x9   : > { %p3830_p2 = scmp.eq.s32.totalorder %s3248_s18, 1  ;;  %p136_p3 = scmp.eq.s32.totalorder %s3249_s19, 1 }
   0xa   : > { %s5990_s20 = scalar_select %p3826_p1, 1, 0 }
   0xb   : > { %p3836_p4 = por %p3826_p1, %p52_p0  ;;  %p3250_p5 = scmp.ge.s32.totalorder %s3751_s17, 1 }
   0xc   : > { %p3841_p6 = por %p136_p3, %p52_p0  ;;  %p143_p7 = scmp.lt.s32.totalorder %s3751_s17, 3 }
   0xd   : > { %s5992_s22 = scalar_select %p3836_p4, 1, 0 }
   0xe   : > { %s5993_s23 = scalar_select %p3841_p6, 1, 0 }
   0xf   : > { %p3846_p8 = pnand %p3250_p5, %p143_p7  ;;  %s3753_s25 = smov [#allocation5]  }
  0x10   : > { %s157_s26 = sshll.u32 %s3753_s25, 4  ;;  %s3754_s28 = smov [#allocation7]   ;;  %s3850_s26 = int_to_ptr.vmem [resolvable:$true] %s157_s26 }
  0x11   : > { %p3492_p9 = pneg %p3846_p8  ;;  %s173_s29 = sshll.u32 %s3754_s28, 4  ;;  %s3861_s29 = int_to_ptr.vmem [resolvable:$true] %s173_s29 }
  0x12   : > { %s3579_s5 = scalar_lea.hbm %s5950_s1, 256 }
  0x13   : > { %p3857_p11 = pnand %p3492_p9, %p3826_p1  ;;  %p3580_p12 = scmp.ne.s32.totalorder %s5950_s1, %s3579_s5 }
  0x14   : > { %p3586_p5 = scmp.lt.u32.totalorder %s3579_s5, %s5950_s1 }
  0x15   : > { %p3581_p13 = pneg %p3857_p11 }
  0x17   : > { %p3582_p0 = pnand %p3581_p13, %p3580_p12 }
  0x19   : > { %p3583_p3 = pneg %p3582_p0 }
  0x1b   : > { %p3588_p7 = pnand %p3586_p5, %p3583_p3 }
  0x1d   : > { %3591 = shalt.err (!%p3588_p7)
}
  0x1e   : > { %s3592_s10 = scalar_lea.vmem %s3850_s26, 256  ;;  %p3600_p1 = scmp.lt.s32.totalorder %s3850_s26, %s3850_s26 }
  0x1f   : > { %p3593_p9 = scmp.ne.s32.totalorder %s3850_s26, %s3592_s10  ;;  %p3601_p12 = scmp.lt.s32.totalorder %s3592_s10, %s3592_s10 }
  0x21   : > { %p3595_p10 = pnand %p3593_p9, %p3581_p13  ;;  %p3602_p0 = por %p3601_p12, %p3600_p1 }
  0x23   : > { %p3596_p6 = pneg %p3595_p10 }
  0x25   : > { %p3603_p4 = pnand %p3602_p0, %p3596_p6 }
  0x27   : > { %3606 = shalt.err (!%p3603_p4)
}
  0x28   : > { %s3755_s11 = smov 64   ;;  %s3756_s18 = smov 4  }
  0x29   : > { %3495 = dma.hbm_to_vmem [thread:$0]  (!%p3857_p11), %s5950_s1, 256, %s3850_s26, [#allocation6], %s3755_s11, %s3755_s11, %s3756_s18  }
  0x2a   : > { %s3607_s4 = scalar_lea.hbm %s5951_s2, 128 }
  0x2b   : > { %p3608_p1 = scmp.ne.s32.totalorder %s5951_s2, %s3607_s4  ;;  %p3614_p10 = scmp.lt.u32.totalorder %s3607_s4, %s5951_s2 }
  0x2d   : > { %p3610_p4 = pnand %p3608_p1, %p3581_p13 }
  0x2f   : > { %p3611_p6 = pneg %p3610_p4 }
  0x31   : > { %p3616_p3 = pnand %p3614_p10, %p3611_p6 }
  0x33   : > { %3619 = shalt.err (!%p3616_p3)
}
  0x34   : > { %s3620_s26 = scalar_lea.vmem %s3861_s29, 128  ;;  %p3628_p12 = scmp.lt.s32.totalorder %s3861_s29, %s3861_s29 }
  0x35   : > { %p3621_p5 = scmp.ne.s32.totalorder %s3861_s29, %s3620_s26  ;;  %p3629_p0 = scmp.lt.s32.totalorder %s3620_s26, %s3620_s26 }
  0x37   : > { %p3623_p7 = pnand %p3621_p5, %p3581_p13  ;;  %p3630_p1 = por %p3629_p0, %p3628_p12 }
  0x39   : > { %p3624_p9 = pneg %p3623_p7 }
  0x3b   : > { %p3631_p4 = pnand %p3630_p1, %p3624_p9 }
  0x3d   : > { %3634 = shalt.err (!%p3631_p4)
}
  0x3e   : > { %3498 = dma.hbm_to_vmem [thread:$0]  (!%p3857_p11), %s5951_s2, 128, %s3861_s29, [#allocation6]  }
  0x3f   : > { %s32_s19 = sadd.s32 1, %s3747_s16  ;;  %s39_s25 = sadd.s32 1, %s3739_s14 }
  0x40   : > { %p34_p13 = scmp.ge.s32.totalorder %s32_s19, 2  ;;  %p46_p6 = scmp.ne.s32.totalorder %s3739_s14, %s3735_s13 }
  0x41   : > { %p47_p10 = scmp.eq.s32.totalorder %s3751_s17, 0  ;;  %p3509_p3 = scmp.lt.s32.totalorder %s3751_s17, 2 }
  0x42   : > { %s6135_s19 = smov (%p34_p13, %s32_s19), 0  ;;  %p3928_p7 = por %p3830_p2, %p46_p6 }
  0x43   : > { %p48_p5 = por %p47_p10, %p46_p6  ;;  %s36_s28 = ssub.s32 %s3747_s16, %s6135_s19 }
  0x44   : > { %s5996_s27 = scalar_select %p3928_p7, 1, 0 }
  0x45   : > { %s184_s30 = sand.u32 1, %s3739_s14   ;;  %p37_p9 = scmp.eq.s32.totalorder %s36_s28, 0 }
  0x46   : > { %s3477_s29 = smul.u32 48, %s184_s30  ;;  %p3935_p11 = pnand %p3509_p3, %p48_p5 }
  0x47   : > { %s3940_s5 = scalar_select %p37_p9, %s3739_s14, %s39_s25  }
  0x48   : > { %s3478_s6 = smul.u32 768, %s3747_s16  ;;  %s188_s7 = scalar_lea.vmem [#allocation2], %s3477_s29 }
  0x49   : > { %s195_s8 = sshll.u32 %s188_s7, 4  ;;  %s3950_s10 = scalar_lea.sflag [#allocation3], %s184_s30  ;;  %s3948_s8 = int_to_ptr.vmem [resolvable:$true] %s195_s8 }
  0x4a   : > { %s3946_s9 = scalar_lea.hbm %s5949_s0, %s3478_s6  ;;  %p3637_p12 = pneg %p3935_p11 }
  0x4b   : > { %s3635_s28 = scalar_lea.hbm %s3946_s9, 768  ;;  %s3640_s6 = scalar_lea.hbm %s5949_s0, 1536 }
  0x4c   : > { %p3636_p2 = scmp.ne.s32.totalorder %s3946_s9, %s3635_s28  ;;  %p3641_p4 = scmp.lt.u32.totalorder %s3946_s9, %s5949_s0 }
  0x4d   : > { %p3642_p13 = scmp.lt.u32.totalorder %s3640_s6, %s3635_s28  ;;  %p3644_p10 = scmp.lt.u32.totalorder %s3635_s28, %s3946_s9 }
  0x4e   : > { %p3638_p0 = pnand %p3637_p12, %p3636_p2 }
  0x4f   : > { %p3643_p6 = por %p3642_p13, %p3641_p4 }
  0x50   : > { %p3639_p1 = pneg %p3638_p0 }
  0x51   : > { %p3645_p3 = por %p3644_p10, %p3643_p6 }
  0x53   : > { %p3646_p5 = pnand %p3645_p3, %p3639_p1 }
  0x55   : > { %3649 = shalt.err (!%p3646_p5)
}
  0x56   : > { %s3650_s30 = scalar_lea.vmem %s3948_s8, 768  ;;  %s3757_s26 = smov [#allocation2]  }
  0x57   : > { %p3651_p9 = scmp.ne.s32.totalorder %s3948_s8, %s3650_s30  ;;  %s3655_s25 = sshll.u32 %s3757_s26, 4  ;;  %s3656_s25 = int_to_ptr.vmem [resolvable:$false] %s3655_s25 }
  0x58   : > { %s3657_s29 = scalar_lea.vmem %s3656_s25, 1536  ;;  %p3658_p7 = scmp.lt.s32.totalorder %s3948_s8, %s3656_s25 }
  0x59   : > { %p3653_p2 = pnand %p3651_p9, %p3637_p12  ;;  %p3659_p4 = scmp.lt.s32.totalorder %s3657_s29, %s3650_s30 }
  0x5b   : > { %p3654_p0 = pneg %p3653_p2  ;;  %p3660_p13 = por %p3659_p4, %p3658_p7 }
  0x5d   : > { %p3661_p6 = pnand %p3660_p13, %p3654_p0 }
  0x5f   : > { %3664 = shalt.err (!%p3661_p6)
}
  0x60   : > { %3502 = dma.hbm_to_vmem [thread:$0]  (!%p3935_p11), %s3946_s9, 768, %s3948_s8, %s3950_s10, %s3755_s11, %s3755_s11, %s3756_s18  }
  0x61   : > { %207 = sbr.rel (%p3846_p8) target bundleno = 855 (0x357), region = 32 }
  0x68   : > { %s3984_s28 = sand.u32 1, %s3735_s13   ;;  %p5998_p7 = scmp.ne.s32.totalorder %s5992_s22, 0 }
  0x69   : > { %s3479_s6 = smul.u32 48, %s3984_s28  ;;  %s210_s7 = scalar_lea.sflag [#allocation3], %s3984_s28 }
  0x6b   : > { %s3988_s21 = scalar_lea.vmem [#allocation2], %s3479_s6 }
  0x6c   : > { %3718 = dma.done.wait (%p5998_p7), %s210_s7, 768  }
  0x6d   : > { %3720 = vsyncadd (%p5998_p7), %s210_s7, 4294966528  ;;  %p5999_p11 = scmp.ne.s32.totalorder %s5990_s20, 0 }
  0x6f   : > { %3722 = dma.done.wait (%p5999_p11), [#allocation6], 384  }
  0x70   : > { %3724 = vsyncadd (%p5999_p11), [#allocation6], 4294966912  ;;  %v3999_v0 = vld [vmem:[%s3988_s21 + $0x1c] sm:$0xf]  ;;  %v4002_v1 = vld [vmem:[%s3988_s21 + $0x4] sm:$0xf] }
  0x71   : > { %v4005_v2 = vld [vmem:[%s3988_s21 + $0x28] sm:$0xf]  ;;  %s3758_s22 = smov 127   ;;  %v4012_v3 = vld [vmem:[%s3988_s21 + $0x10] sm:$0xf]  ;;  %v273_v4 = vshrl.u32 %v4002_v1, 16 }
  0x72   : > { %543 = vrot.lane.b32.xlu1 %v3999_v0, %s3758_s22  ;;  %535 = vrot.lane.b32.xlu0 %v4002_v1, %s3758_s22  ;;  %v819_v5 = vshll.u32 %v4002_v1, 16  ;;  %v278_v6 = vpack.i.b16 %v4005_v2, %v3999_v0  ;;  %vm809_vm0 = vsmask.f32 3328  ;;  %vm810_vm1 = vsmask.f32 7440  ;;  %s3759_s20 = smov 126  }
  0x73   : > { %v272_v7 = vpack.i.b16 %v4012_v3, %v4002_v1  ;;  %v4021_v8 = vld [vmem:[%s3988_s21 + $0x14] sm:$0x1]  ;;  %v274_v9 = vshrl.u32 %v4012_v3, 16  ;;  %v839_v10 = vshll.u32 %v4012_v3, 16  ;;  %v4026_v11 = vld [vmem:[%s3988_s21 + $0x8] sm:$0x1]  ;;  %vm4063_vm2 = vmor %vm809_vm0, %vm810_vm1 }
  0x74   : > { %v848_v12 = vshll.u32 %v4021_v8, 16  ;;  %v4029_v13 = vrot.slane %v819_v5, 5  ;;  %v824_v14 = vrot.slane %v273_v4, 4  ;;  %v828_v15 = vshll.u32 %v4026_v11, 16  ;;  %v4035_v16 = vld [vmem:[%s3988_s21 + $0x2c] sm:$0x1] }
  0x75   : > { %v4041_v17 = vrot.slane %v839_v10, 5  ;;  %v844_v18 = vrot.slane %v274_v9, 4  ;;  %v280_v19 = vshrl.u32 %v4005_v2, 16  ;;  %v879_v20 = vshll.u32 %v4005_v2, 16  ;;  %v4048_v21 = vld [vmem:[%s3988_s21 + $0x20] sm:$0x1] }
  0x76   : > { %547 = vrot.lane.b32.xlu1 %v4005_v2, %s3758_s22  ;;  %539 = vrot.lane.b32.xlu0 %v4012_v3, %s3758_s22  ;;  %v850_v22 = vrot.slane %v848_v12, 5  ;;  %v825_v23 = vor.u32 %v824_v14, %v4029_v13  ;;  %v830_v24 = vrot.slane %v828_v15, 5  ;;  %v888_v25 = vshll.u32 %v4035_v16, 16  ;;  %v4059_v30 = vld [vmem:[%s3988_s21 + $0xc] sm:$0xf]  ;;  %s3762_s24 = smov 16  }
  0x77   : > { %v845_v26 = vor.u32 %v844_v18, %v4041_v17  ;;  %v4053_v27 = vrot.slane %v879_v20, 5  ;;  %v884_v28 = vrot.slane %v280_v19, 4  ;;  %v279_v29 = vshrl.u32 %v3999_v0, 16  ;;  %v4089_v46 = vld [vmem:[%s3988_s21] sm:$0xf]  ;;  %s3763_s11 = smov 32  }
  0x78   : > { %v826_v32 = vrot.slane %v825_v23, 4  ;;  %v859_v33 = vshll.u32 %v3999_v0, 16  ;;  %v868_v34 = vshll.u32 %v4048_v21, 16  ;;  %v262_v38 = vshrl.u32 %v4059_v30, 16  ;;  %v4092_v47 = vld [vmem:[%s3988_s21 + $0x24] sm:$0xf] }
  0x79   : > { %v846_v35 = vrot.slane %v845_v26, 4  ;;  %v885_v36 = vor.u32 %v884_v28, %v4053_v27  ;;  %v864_v37 = vrot.slane %v279_v29, 4  ;;  %v890_v39 = vrot.slane %v888_v25, 5  ;;  %v4108_v57 = vld [vmem:[%s3988_s21 + $0x18] sm:$0xf]  ;;  %s3764_s18 = smov 64  }
  0x7a   : > { %1434 = vrot.lane.b32.xlu1 %v4012_v3, %s3759_s20  ;;  %1430 = vrot.lane.b32.xlu0 %v4002_v1, %s3759_s20  ;;  %v861_v40 = vrot.slane %v859_v33, 5  ;;  %v834_v41 = vshll.u32 %v4059_v30, 16  ;;  %v4084_v43 = vsel %vm4063_vm2, %v826_v32, %v830_v24  ;;  %v833_v45 = vrot.slane %v262_v38, 4  ;;  %s3765_s4 = smov 48   ;;  %s3766_s8 = smov 80  }
  0x7b   : > { %v4080_v42 = vsel %vm4063_vm2, %v846_v35, %v850_v22  ;;  %v886_v44 = vrot.slane %v885_v36, 4  ;;  %v870_v50 = vrot.slane %v868_v34, 5  ;;  %v261_v52 = vshrl.u32 %v4089_v46, 16  ;;  %s3767_s9 = smov 96   ;;  %s3768_s10 = smov 112  }
  0x7c   : > { %v906_v48 = vpack.i.b16 %v4080_v42, %v4084_v43  ;;  %v865_v49 = vor.u32 %v864_v37, %v861_v40  ;;  %v836_v51 = vrot.slane %v834_v41, 5  ;;  %v814_v53 = vshll.u32 %v4089_v46, 16  ;;  %s3258_s30 = sshll.u32 %s3984_s28, 6  ;;  %s3476_s25 = sshll.u32 %s3743_s15, 10 }
  0x7d   : > { %v268_v54 = vshrl.u32 %v4092_v47, 16  ;;  %v4105_v55 = vsel %vm4063_vm2, %v886_v44, %v890_v39  ;;  %v813_v59 = vrot.slane %v261_v52, 4  ;;  %v874_v63 = vshll.u32 %v4092_v47, 16  ;;  %s243_s26 = scalar_lea.vmem [#allocation8], %s3258_s30  ;;  %s5897_s21 = scalar_lea.hbm %s5952_s3, %s3476_s25 }
  0x7e   : > { %1442 = vrot.lane.b32.xlu1 %v4005_v2, %s3759_s20  ;;  %1438 = vrot.lane.b32.xlu0 %v3999_v0, %s3759_s20  ;;  %v866_v56 = vrot.slane %v865_v49, 4  ;;  %v837_v58 = vor.u32 %v836_v51, %v833_v45  ;;  %v816_v60 = vrot.slane %v814_v53, 5  ;;  %v267_v5 = vshrl.u32 %v4108_v57, 16  ;;  %s3141_s29 = sshll.u32 %s243_s26, 4  ;;  %s3126_s15 = scalar_lea.sflag [#allocation4], %s3984_s28  ;;  %s5899_s29 = int_to_ptr.vmem [resolvable:$true] %s3141_s29 }
  0x7f   : > { %v873_v61 = vrot.slane %v268_v54, 4  ;;  %v854_v10 = vshll.u32 %v4108_v57, 16  ;;  %v876_v18 = vrot.slane %v874_v63, 5  ;;  %v1989_v23 = vrot.slane %v4002_v1, 5  ;;  %p6126_p12 = scmp.ne.s32.totalorder %s5996_s27, 0 }
  0x80   : > { %v4116_v62 = vsel %vm4063_vm2, %v866_v56, %v870_v50  ;;  %v838_v14 = vrot.slane %v837_v58, 4  ;;  %v817_v15 = vor.u32 %v816_v60, %v813_v59  ;;  %v853_v20 = vrot.slane %v267_v5, 4 }
  0x81   : > { %v912_v12 = vpack.i.b16 %v4105_v55, %v4116_v62  ;;  %v856_v22 = vrot.slane %v854_v10, 5  ;;  %v286_v24 = vlaneseq  ;;  %v877_v26 = vor.u32 %v876_v18, %v873_v61 }
  0x82   : > { %537 = vrot.lane.b32.xlu1 %v4059_v30, %s3758_s22  ;;  %533 = vrot.lane.b32.xlu0 %v4089_v46, %s3758_s22  ;;  %v818_v25 = vrot.slane %v817_v15, 4  ;;  %vm1984_vm3 = vcmask 1042432   ;;  %vm1985_vm4 = vcmask 1046532   ;;  %v4137_v32 = vsel %vm4063_vm2, %v838_v14, %v4041_v17 }
  0x83   : > { %v857_v28 = vor.u32 %v856_v22, %v853_v20  ;;  %v1991_v34 = vrot.slane %v1989_v23, 4  ;;  %v2003_v35 = vrot.slane %v3999_v0, 5  ;;  %v878_v37 = vrot.slane %v877_v26, 4  ;;  %vm4148_vm5 = vmor %vm1984_vm3, %vm1985_vm4 }
  0x84   : > { %v4142_v33 = vsel %vm4063_vm2, %v818_v25, %v4029_v13  ;;  %v1992_v41 = vrot.slane %v4026_v11, 5  ;;  %v3760_v44 = vmov 1983009808   ;;  %v2006_v13 = vrot.slane %v4048_v21, 5 }
  0x85   : > { %v894_v36 = vpack.i.b16 %v4137_v32, %v4142_v33  ;;  %v858_v39 = vrot.slane %v857_v28, 4  ;;  %v284_v45 = vunpack.c.l.s4 %v3760_v44  ;;  %v2005_v49 = vrot.slane %v2003_v35, 4 }
  0x86   : > { %545 = vrot.lane.b32.xlu1 %v4092_v47, %s3758_s22  ;;  %541 = vrot.lane.b32.xlu0 %v4108_v57, %s3758_s22  ;;  %v1996_v50 = vrot.slane %v4012_v3, 5  ;;  %v4157_v51 = vsel %vm4063_vm2, %v878_v37, %v4053_v27  ;;  %v1999_v11 = vrot.slane %v4021_v8, 5  ;;  %v4166_v56 = vshrl.u32 %v286_v24, 7 }
  0x87   : > { %v4161_v53 = vsel %vm4063_vm2, %v858_v39, %v861_v40  ;;  %v4174_v27 = vsel %vm4148_vm5, %v1991_v34, %v1992_v41  ;;  %v3343_v40 = vrot.slane %v4089_v46, 9  ;;  %v2010_v8 = vrot.slane %v4005_v2, 5 }
  0x88   : > { %v900_v21 = vpack.i.b16 %v4157_v51, %v4161_v53  ;;  %v1998_v31 = vrot.slane %v1996_v50, 4  ;;  %v285_v58 = vunpack.c.0.s8 %v284_v45  ;;  %v2030_v59 = vshrl.u32 %v4174_v27, 16 }
  0x89   : > { %v4181_v60 = vsel %vm4148_vm5, %v2005_v49, %v2006_v13  ;;  %v2013_v61 = vrot.slane %v4035_v16, 5  ;;  %v2012_v14 = vrot.slane %v2010_v8, 4  ;;  %v3345_v15 = vrot.slane %v4108_v57, 9 }
  0x8a   : > { %1158 = vrot.lane.b32.xlu1 %v4080_v42, %s3758_s22  ;;  %1154 = vrot.lane.b32.xlu0 %v4084_v43, %s3758_s22  ;;  %v2036_v63 = vshrl.u32 %v4181_v60, 16  ;;  %v4187_v10 = vsel %vm4148_vm5, %v1998_v31, %v1999_v11  ;;  %v4199_v20 = vsel %vm4148_vm5, %v3343_v40, %v1989_v23  ;;  %v3344_v22 = vrot.slane %v4059_v30, 9 }
  0x8b   : > { %v2031_v18 = vshrl.u32 %v4187_v10, 16  ;;  %v2018_v24 = vshrl.u32 %v4199_v20, 16  ;;  %v4205_v25 = vsel %vm4148_vm5, %v2012_v14, %v2013_v61  ;;  %v3346_v26 = vrot.slane %v4092_v47, 9 }
  0x8c   : > { %v2037_v37 = vshrl.u32 %v4205_v25, 16  ;;  %v4215_v23 = vsel %vm4148_vm5, %v3345_v15, %v2003_v35  ;;  %v4218_v39 = vsub.s32 %v285_v58, %v4166_v56  ;;  %v4223_v44 = vsel %vm4148_vm5, %v3344_v22, %v1996_v50 }
  0x8d   : > { %v4208_v28 = vpack.i.b16 %v2031_v18, %v2030_v59  ;;  %v2024_v41 = vshrl.u32 %v4215_v23, 16  ;;  %v2019_v35 = vshrl.u32 %v4223_v44, 16  ;;  %v4234_v49 = vsel %vm4148_vm5, %v3346_v26, %v2010_v8 }
  0x8e   : > { %1166 = vrot.lane.b32.xlu1 %v4105_v55, %s3758_s22  ;;  %1162 = vrot.lane.b32.xlu0 %v4116_v62, %s3758_s22  ;;  %v4229_v45 = vpack.i.b16 %v2037_v37, %v2036_v63  ;;  %v4240_v13 = vrot.slane %v906_v48, %v4218_v39  ;;  %v2025_v31 = vshrl.u32 %v4234_v49, 16  ;;  %v4251_v17 = vrot.slane %v912_v12, %v4218_v39 }
  0x8f   : > { %v4253_v40 = vpack.i.b16 %v2019_v35, %v2018_v24  ;;  %v275_v48 = vpack.i.b16 %v274_v9, %v273_v4  ;;  %v281_v8 = vpack.i.b16 %v280_v19, %v279_v29  ;;  %v4273_v12 = vrot.slane %v278_v6, %v4218_v39 }
  0x90   : > { %v4263_v58 = vpack.i.b16 %v2025_v31, %v2024_v41  ;;  %v1000_v4 = vcombine.low %v4240_v13, %v4251_v17  ;;  %v4281_v9 = vrot.slane %v272_v7, %v4218_v39  ;;  %v4287_v19 = vpack.i.b16 %v262_v38, %v261_v52 }
  0x91   : > { %v4299_v1 = vrot.slane %v894_v36, %v4218_v39  ;;  %v4302_v2 = vrot.slane %v900_v21, %v4218_v39  ;;  %v260_v6 = vpack.i.b16 %v4059_v30, %v4089_v46  ;;  %v266_v7 = vpack.i.b16 %v4092_v47, %v4108_v57 }
  0x92   : > { %1432 = vrot.lane.b32.xlu1 %v4059_v30, %s3759_s20  ;;  %1428 = vrot.lane.b32.xlu0 %v4089_v46, %s3759_s20  ;;  %v366_v0 = vcombine.low %v4281_v9, %v4273_v12  ;;  %v908_v30 = vshrl.u32 %v4080_v42, 16  ;;  %v907_v46 = vshrl.u32 %v4084_v43, 16  ;;  %v914_v36 = vshrl.u32 %v4105_v55, 16 }
  0x93   : > { %v4335_v29 = vrot.slane %v260_v6, %v4218_v39  ;;  %v4338_v38 = vrot.slane %v266_v7, %v4218_v39  ;;  %v913_v21 = vshrl.u32 %v4116_v62, 16  ;;  %v896_v59 = vshrl.u32 %v4137_v32, 16 }
  0x94   : > { %v895_v61 = vshrl.u32 %v4142_v33, 16  ;;  %v902_v63 = vshrl.u32 %v4157_v51, 16  ;;  %v901_v14 = vshrl.u32 %v4161_v53, 16  ;;  %v3761_v15 = vmov 1934713408  }
  0x95   : > { %v4386_v41 = vrot.slane %v275_v48, %v4218_v39  ;;  %v4389_v35 = vrot.slane %v281_v8, %v4218_v39  ;;  %v269_v48 = vpack.i.b16 %v268_v54, %v267_v5  ;;  %vm488_vm6 = vcmask 130048  }
  0x96   : > { %1440 = vrot.lane.b32.xlu1 %v4092_v47, %s3759_s20  ;;  %1436 = vrot.lane.b32.xlu0 %v4108_v57, %s3759_s20  ;;  %v897_v18 = vpack.i.b16 %v896_v59, %v895_v61  ;;  %v4420_v57 = vrot.slane %v4287_v19, %v4218_v39  ;;  %vm492_vm7 = vcmask 261120   ;;  %vm495_vm8 = vcmask 392192  }
  0x97   : > { %6008 = vst [vmem:[#allocation16_spill] sm:$0xff] %v4386_v41  ;;  %6009 = vst [vmem:[#allocation17_spill] sm:$0xff] %v4389_v35  ;;  %v400_v6 = vcombine.low %v4386_v41, %v4389_v35  ;;  %v4423_v47 = vrot.slane %v269_v48, %v4218_v39  ;;  %vm498_vm9 = vcmask 523264   ;;  %vm501_vm10 = vcmask 654336  }
  0x98   : > { %v4375_v22 = vrot.slane %v897_v18, %v4218_v39  ;;  %6010 = vst [vmem:[#allocation18_spill] sm:$0xff] %v4420_v57  ;;  %vm504_vm11 = vcmask 785408   ;;  %vm507_vm12 = vcmask 916480   ;;  %vm2839_vm13 = vcmask 1041408  }
  0x99   : > { %6011 = vst [vmem:[#allocation19_spill] sm:$0xff] %v4423_v47  ;;  %vm2844_vm14 = vcmask 1043456   ;;  %vm2849_vm15 = vcmask 1045504  }
  0x9a   : > { %1156 = vrot.lane.b32.xlu1 %v4137_v32, %s3758_s22  ;;  %1152 = vrot.lane.b32.xlu0 %v4142_v33, %s3758_s22  ;;  %6006 = vst [vmem:[#allocation14_spill] sm:$0xff] %v4375_v22 }
  0x9e   : > { %1164 = vrot.lane.b32.xlu1 %v4157_v51, %s3758_s22  ;;  %1160 = vrot.lane.b32.xlu0 %v4161_v53, %s3758_s22 }
  0xa2   : > { %1710 = vrot.lane.b32.xlu1 %v4080_v42, %s3759_s20  ;;  %1706 = vrot.lane.b32.xlu0 %v4084_v43, %s3759_s20  ;;  %v909_v42 = vpack.i.b16 %v908_v30, %v907_v46  ;;  %v915_v43 = vpack.i.b16 %v914_v36, %v913_v21  ;;  %v332_v21 = vcombine.low %v4420_v57, %v4423_v47 }
  0xa6   : > { %1718 = vrot.lane.b32.xlu1 %v4105_v55, %s3759_s20  ;;  %1714 = vrot.lane.b32.xlu0 %v4116_v62, %s3759_s20  ;;  %v301_v55 = vunpack.c.l.s4 %v3761_v15  ;;  %v903_v62 = vpack.i.b16 %v902_v63, %v901_v14 }
  0xa8   : > { %v4378_v24 = vrot.slane %v903_v62, %v4218_v39 }
  0xaa   : > { %1708 = vrot.lane.b32.xlu1 %v4137_v32, %s3759_s20  ;;  %1704 = vrot.lane.b32.xlu0 %v4142_v33, %s3759_s20  ;;  %v302_v33 = vunpack.c.0.s8 %v301_v55  ;;  %6007 = vst [vmem:[#allocation15_spill] sm:$0xff] %v4378_v24  ;;  %v966_v31 = vcombine.low %v4375_v22, %v4378_v24 }
  0xac   : > { %v4381_v26 = vsub.s32 %v302_v33, %v4166_v56 }
  0xae   : > { %1716 = vrot.lane.b32.xlu1 %v4157_v51, %s3759_s20  ;;  %1712 = vrot.lane.b32.xlu0 %v4161_v53, %s3759_s20  ;;  %v4365_v51 = vrot.slane %v909_v42, %v4218_v39  ;;  %v4368_v53 = vrot.slane %v915_v43, %v4218_v39  ;;  %v4411_v8 = vrot.slane %v966_v31, %v4381_v26 }
  0xaf   : > { %v4416_v30 = vrot.slane %v400_v6, %v4381_v26  ;;  %v4435_v5 = vrot.slane %v366_v0, %v4381_v26  ;;  %v4443_v46 = vrot.slane %v1000_v4, %v4381_v26  ;;  %v4460_v61 = vrot.slane %v332_v21, %v4381_v26 }
  0xb0   : > { %6004 = vst [vmem:[#allocation12_spill] sm:$0xff] %v4365_v51  ;;  %6005 = vst [vmem:[#allocation13_spill] sm:$0xff] %v4368_v53  ;;  %v1034_v37 = vcombine.low %v4365_v51, %v4368_v53  ;;  %v3287_v54 = vcombine.low %v4411_v8, %v4411_v8 }
  0xb1   : > { %6012 = vst [vmem:[#allocation20_spill] sm:$0xff] %v4435_v5  ;;  %6013 = vst [vmem:[#allocation21_spill] sm:$0xff] %v4443_v46  ;;  %v3266_v36 = vcombine.low %v4416_v30, %v4416_v30  ;;  %v3408_v0 = vcombine.high %v4435_v5, %v4435_v5  ;;  %v3424_v4 = vcombine.high %v4443_v46, %v4443_v46 }
  0xb2   : > { %2277 = vrot.lane.b32.xlu0 %v4174_v27, %s3758_s22  ;;  %2281 = vrot.lane.b32.xlu1 %v4187_v10, %s3758_s22  ;;  %v4398_v56 = vrot.slane %v1034_v37, %v4381_v26  ;;  %6014 = vst [vmem:[#allocation22_spill] sm:$0xff] %v4460_v61  ;;  %v3259_v63 = vcombine.low %v4460_v61, %v4460_v61 }
  0xb4   : > { %v3294_v7 = vcombine.low %v4398_v56, %v4398_v56 }
  0xb6   : > { %2285 = vrot.lane.b32.xlu0 %v4181_v60, %s3758_s22  ;;  %2289 = vrot.lane.b32.xlu1 %v4205_v25, %s3758_s22 }
  0xba   : > { %2275 = vrot.lane.b32.xlu0 %v4199_v20, %s3758_s22  ;;  %2279 = vrot.lane.b32.xlu1 %v4223_v44, %s3758_s22 }
  0xbe   : > { %2283 = vrot.lane.b32.xlu0 %v4215_v23, %s3758_s22  ;;  %2287 = vrot.lane.b32.xlu1 %v4234_v49, %s3758_s22  ;;  %s3665_s22 = scalar_lea.vmem %s5899_s29, 1024 }
  0xbf   : > { %p3666_p8 = scmp.ne.s32.totalorder %s5899_s29, %s3665_s22 }
  0xc1   : > { %p3667_p1 = pnand %p3666_p8, %p6126_p12 }
  0xc2   : > { %2553 = vrot.lane.b32.xlu0 %v4174_v27, %s3759_s20  ;;  %2557 = vrot.lane.b32.xlu1 %v4187_v10, %s3759_s20 }
  0xc3   : > { %p3668_p10 = pneg %p3667_p1 }
  0xc6   : > { %2561 = vrot.lane.b32.xlu0 %v4181_v60, %s3759_s20  ;;  %2565 = vrot.lane.b32.xlu1 %v4205_v25, %s3759_s20 }
  0xca   : > { %2551 = vrot.lane.b32.xlu0 %v4199_v20, %s3759_s20  ;;  %2555 = vrot.lane.b32.xlu1 %v4223_v44, %s3759_s20 }
  0xce   : > { %2559 = vrot.lane.b32.xlu0 %v4215_v23, %s3759_s20  ;;  %2563 = vrot.lane.b32.xlu1 %v4234_v49, %s3759_s20  ;;  %s3770_s20 = smov [#allocation8]  }
  0xd2   : > { %1090 = vrot.lane.b32.xlu0 %v3294_v7, %s3762_s24  ;;  %1055 = vrot.lane.b32.xlu1 %v3287_v54, %s3762_s24 }
  0xd6   : > { %456 = vrot.lane.b32.xlu0 %v3266_v36, %s3762_s24  ;;  %461 = vrot.lane.b32.xlu1 %v3408_v0, %s3763_s11 }
  0xda   : > { %1095 = vrot.lane.b32.xlu0 %v3424_v4, %s3763_s11 }
  0xde   : > { %421 = vrot.lane.b32.xlu0 %v3259_v63, %s3762_s24 }
  0xe4   : > { %v544_v14 = vpop.permute.xlu1 %543  ;;  %v536_v42 = vpop.permute.xlu0 %535 }
  0xe5   : > { %v570_v15 = vshrl.u32 %v544_v14, 16  ;;  %v564_v55 = vshrl.u32 %v536_v42, 16 }
  0xe8   : > { %v548_v18 = vpop.permute.xlu1 %547  ;;  %v540_v62 = vpop.permute.xlu0 %539 }
  0xe9   : > { %v569_v33 = vpack.i.b16 %v548_v18, %v544_v14  ;;  %v571_v37 = vshrl.u32 %v548_v18, 16  ;;  %v563_v31 = vpack.i.b16 %v540_v62, %v536_v42  ;;  %v565_v6 = vshrl.u32 %v540_v62, 16 }
  0xeb   : > { %v572_v48 = vpack.i.b16 %v571_v37, %v570_v15  ;;  %v4469_v7 = vrot.slane %v569_v33, %v4218_v39  ;;  %v566_v54 = vpack.i.b16 %v565_v6, %v564_v55  ;;  %v4472_v36 = vrot.slane %v563_v31, %v4218_v39 }
  0xec   : > { %v4474_v0 = vpop.permute.xlu1 %1434  ;;  %v4476_v21 = vpop.permute.xlu0 %1430 }
  0xed   : > { %v4479_v4 = vrot.slane %v572_v48, %v4218_v39  ;;  %v657_v63 = vcombine.low %v4472_v36, %v4469_v7  ;;  %v4484_v14 = vrot.slane %v566_v54, %v4218_v39  ;;  %v1458_v42 = vpack.i.b16 %v4474_v0, %v4476_v21 }
  0xee   : > { %v1460_v57 = vshrl.u32 %v4474_v0, 16  ;;  %v658_v0 = vcombine.high %v4472_v36, %v4469_v7 }
  0xef   : > { %v4489_v15 = vrot.slane %v657_v63, %v4381_v26  ;;  %v691_v55 = vcombine.low %v4484_v14, %v4479_v4  ;;  %v4501_v48 = vrot.slane %v1458_v42, %v4218_v39 }
  0xf0   : > { %v1443_v62 = vpop.permute.xlu1 %1442  ;;  %v1439_v33 = vpop.permute.xlu0 %1438 }
  0xf1   : > { %6015 = vst [vmem:[#allocation23_spill] sm:$0xff] %v4489_v15  ;;  %v1464_v37 = vpack.i.b16 %v1443_v62, %v1439_v33  ;;  %v3416_v31 = vcombine.high %v4489_v15, %v4489_v15  ;;  %v4498_v6 = vrot.slane %v691_v55, %v4381_v26 }
  0xf3   : > { %v4504_v54 = vrot.slane %v1464_v37, %v4218_v39  ;;  %752 = vrot.lane.b32.xlu1 %v3416_v31, %s3763_s11  ;;  %v3280_v59 = vcombine.low %v4498_v6, %v4498_v6 }
  0xf4   : > { %v538_v63 = vpop.permute.xlu1 %537  ;;  %v534_v43 = vpop.permute.xlu0 %533 }
  0xf5   : > { %v1552_v19 = vcombine.low %v4501_v48, %v4504_v54  ;;  %v553_v32 = vshrl.u32 %v538_v63, 16  ;;  %v552_v18 = vshrl.u32 %v534_v43, 16  ;;  %747 = vrot.lane.b32.xlu0 %v3280_v59, %s3762_s24  ;;  %v551_v55 = vpack.i.b16 %v538_v63, %v534_v43 }
  0xf7   : > { %v4513_v42 = vrot.slane %v1552_v19, %v4381_v26  ;;  %v554_v37 = vpack.i.b16 %v553_v32, %v552_v18  ;;  %v4518_v3 = vrot.slane %v551_v55, %v4218_v39 }
  0xf8   : > { %v546_v52 = vpop.permute.xlu1 %545  ;;  %v542_v11 = vpop.permute.xlu0 %541 }
  0xf9   : > { %6016 = vst [vmem:[#allocation24_spill] sm:$0xff] %v4513_v42  ;;  %v559_v31 = vshrl.u32 %v546_v52, 16  ;;  %v557_v50 = vpack.i.b16 %v546_v52, %v542_v11  ;;  %v558_v34 = vshrl.u32 %v542_v11, 16  ;;  %v3440_v16 = vcombine.high %v4513_v42, %v4513_v42 }
  0xfa   : > { %v4529_v59 = vrot.slane %v554_v37, %v4218_v39  ;;  %v1465_v37 = vshrl.u32 %v1439_v33, 16 }
  0xfb   : > { %v560_v46 = vpack.i.b16 %v559_v31, %v558_v34  ;;  %v4521_v15 = vrot.slane %v557_v50, %v4218_v39  ;;  %1647 = vrot.lane.b32.xlu1 %v3440_v16, %s3763_s11 }
  0xfc   : > { %v4524_v19 = vpop.permute.xlu1 %1158  ;;  %v4526_v32 = vpop.permute.xlu0 %1154  ;;  %6017 = vst [vmem:[#allocation25_spill] sm:$0xff] %v4529_v59 }
  0xfd   : > { %v589_v11 = vcombine.low %v4518_v3, %v4521_v15  ;;  %v4534_v52 = vrot.slane %v560_v46, %v4218_v39  ;;  %v1466_v46 = vshrl.u32 %v1443_v62, 16  ;;  %v1184_v36 = vshrl.u32 %v4524_v19, 16 }
  0xff   : > { %6018 = vst [vmem:[#allocation26_spill] sm:$0xff] %v4534_v52  ;;  %v4537_v34 = vrot.slane %v589_v11, %v4381_v26  ;;  %v623_v50 = vcombine.low %v4529_v59, %v4534_v52 }
 0x100   : > { %v4543_v43 = vpop.permute.xlu1 %1166  ;;  %v4545_v18 = vpop.permute.xlu0 %1162 }
 0x101   : > { %6019 = vst [vmem:[#allocation27_spill] sm:$0xff] %v4537_v34  ;;  %v3412_v63 = vcombine.high %v4537_v34, %v4537_v34  ;;  %v4550_v55 = vrot.slane %v623_v50, %v4381_v26  ;;  %v1459_v34 = vshrl.u32 %v4476_v21, 16  ;;  %v1467_v50 = vpack.i.b16 %v1466_v46, %v1465_v37 }
 0x103   : > { %717 = vrot.lane.b32.xlu1 %v3412_v63, %s3763_s11  ;;  %v3273_v42 = vcombine.low %v4550_v55, %v4550_v55  ;;  %v1461_v35 = vpack.i.b16 %v1460_v57, %v1459_v34  ;;  %v4567_v21 = vrot.slane %v1467_v50, %v4218_v39  ;;  %v1183_v34 = vshrl.u32 %v4526_v32, 16 }
 0x104   : > { %v1433_v31 = vpop.permute.xlu1 %1432  ;;  %v1429_v11 = vpop.permute.xlu0 %1428 }
 0x105   : > { %v1448_v16 = vshrl.u32 %v1433_v31, 16  ;;  %v1447_v5 = vshrl.u32 %v1429_v11, 16  ;;  %712 = vrot.lane.b32.xlu0 %v3273_v42, %s3762_s24  ;;  %v1446_v47 = vpack.i.b16 %v1433_v31, %v1429_v11  ;;  %v1190_v42 = vshrl.u32 %v4543_v43, 16 }
 0x106   : > { %v4588_v46 = vrot.slane %v1461_v35, %v4218_v39  ;;  %v1185_v61 = vpack.i.b16 %v1184_v36, %v1183_v34 }
 0x107   : > { %v1449_v63 = vpack.i.b16 %v1448_v16, %v1447_v5  ;;  %v4559_v52 = vrot.slane %v1446_v47, %v4218_v39  ;;  %v1189_v5 = vshrl.u32 %v4545_v18, 16 }
 0x108   : > { %v1441_v22 = vpop.permute.xlu1 %1440  ;;  %v1437_v24 = vpop.permute.xlu0 %1436 }
 0x109   : > { %v1454_v62 = vshrl.u32 %v1441_v22, 16  ;;  %v1452_v33 = vpack.i.b16 %v1441_v22, %v1437_v24  ;;  %v1453_v41 = vshrl.u32 %v1437_v24, 16  ;;  %v4576_v57 = vrot.slane %v1449_v63, %v4218_v39 }
 0x10a   : > { %v1191_v11 = vpack.i.b16 %v1190_v42, %v1189_v5 }
 0x10b   : > { %v1455_v59 = vpack.i.b16 %v1454_v62, %v1453_v41  ;;  %v4562_v51 = vrot.slane %v1452_v33, %v4218_v39  ;;  %6020 = vst [vmem:[#allocation28_spill] sm:$0xff] %v4576_v57  ;;  %v4600_v33 = vrot.slane %v658_v0, %v4381_v26 }
 0x10c   : > { %v4571_v22 = vpop.permute.xlu1 %1156  ;;  %v4573_v24 = vpop.permute.xlu0 %1152  ;;  %v4615_v0 = vrot.slane %v1191_v11, %v4218_v39 }
 0x10d   : > { %v1484_v41 = vcombine.low %v4559_v52, %v4562_v51  ;;  %v4581_v47 = vrot.slane %v1455_v59, %v4218_v39  ;;  %v1172_v7 = vshrl.u32 %v4571_v22, 16  ;;  %v1171_v16 = vshrl.u32 %v4573_v24, 16  ;;  %6023 = vst [vmem:[#allocation31_spill] sm:$0xff] %v4600_v33 }
 0x10e   : > { %6025 = vst [vmem:[#allocation33_spill] sm:$0xff] %v4615_v0 }
 0x10f   : > { %6021 = vst [vmem:[#allocation29_spill] sm:$0xff] %v4581_v47  ;;  %v4593_v31 = vrot.slane %v1484_v41, %v4381_v26  ;;  %v1518_v59 = vcombine.low %v4576_v57, %v4581_v47  ;;  %v1173_v50 = vpack.i.b16 %v1172_v7, %v1171_v16  ;;  %v1586_v41 = vcombine.low %v4588_v46, %v4567_v21 }
 0x110   : > { %v4597_v63 = vpop.permute.xlu1 %1164  ;;  %v1161_v62 = vpop.permute.xlu0 %1160 }
 0x111   : > { %6022 = vst [vmem:[#allocation30_spill] sm:$0xff] %v4593_v31  ;;  %v1178_v35 = vshrl.u32 %v4597_v63, 16  ;;  %v1177_v53 = vshrl.u32 %v1161_v62, 16  ;;  %v3436_v37 = vcombine.high %v4593_v31, %v4593_v31  ;;  %v4608_v47 = vrot.slane %v1518_v59, %v4381_v26 }
 0x112   : > { %v4611_v42 = vrot.slane %v1173_v50, %v4218_v39  ;;  %v4631_v59 = vrot.slane %v1185_v61, %v4218_v39  ;;  %v1188_v50 = vpack.i.b16 %v4543_v43, %v4545_v18  ;;  %v1182_v43 = vpack.i.b16 %v4524_v19, %v4526_v32 }
 0x113   : > { %v1179_v5 = vpack.i.b16 %v1178_v35, %v1177_v53  ;;  %1612 = vrot.lane.b32.xlu1 %v3436_v37, %s3763_s11  ;;  %v3315_v7 = vcombine.low %v4608_v47, %v4608_v47  ;;  %v3283_v53 = vcombine.low %v4600_v33, %v4600_v33  ;;  %v1594_v37 = vrot.slane %v1586_v41, %v4381_v26 }
 0x114   : > { %6024 = vst [vmem:[#allocation32_spill] sm:$0xff] %v4611_v42  ;;  %v4619_v16 = vpop.permute.xlu1 %1710  ;;  %v4621_v31 = vpop.permute.xlu0 %1706  ;;  %6027 = vst [vmem:[#allocation35_spill] sm:$0xff] %v4631_v59  ;;  %v3417_v41 = vcombine.high %v4498_v6, %v4498_v6  ;;  %v4654_v6 = vrot.slane %v1188_v50, %v4218_v39  ;;  %v3425_v19 = vcombine.high %v4398_v56, %v4398_v56 }
 0x115   : > { %v4624_v36 = vrot.slane %v1179_v5, %v4218_v39  ;;  %v1736_v34 = vshrl.u32 %v4619_v16, 16  ;;  %1607 = vrot.lane.b32.xlu0 %v3315_v7, %s3762_s24  ;;  %v1735_v11 = vshrl.u32 %v4621_v31, 16  ;;  %v1310_v7 = vcombine.low %v4631_v59, %v4615_v0 }
 0x116   : > { %v3322_v33 = vcombine.low %v1594_v37, %v1594_v37  ;;  %v1170_v32 = vpack.i.b16 %v4571_v22, %v4573_v24  ;;  %v3441_v59 = vcombine.high %v1594_v37, %v1594_v37  ;;  %v4689_v37 = vrot.slane %v4208_v28, %v4218_v39 }
 0x117   : > { %6026 = vst [vmem:[#allocation34_spill] sm:$0xff] %v4624_v36  ;;  %762 = vrot.lane.b32.xlu1 %v3283_v53, %s3764_s18  ;;  %v1737_v5 = vpack.i.b16 %v1736_v34, %v1735_v11  ;;  %v1176_v11 = vpack.i.b16 %v4597_v63, %v1161_v62  ;;  %v1318_v50 = vrot.slane %v1310_v7, %v4381_v26 }
 0x118   : > { %v4642_v57 = vpop.permute.xlu1 %1718  ;;  %v4644_v61 = vpop.permute.xlu0 %1714  ;;  %v1242_v22 = vcombine.low %v4611_v42, %v4624_v36  ;;  %v6029_v63 = vcombine.low %v4299_v1, %v4302_v2 }
 0x119   : > { %v1742_v18 = vshrl.u32 %v4642_v57, 16  ;;  %v1741_v35 = vshrl.u32 %v4644_v61, 16  ;;  %757 = vrot.lane.b32.xlu0 %v3417_v41, %s3765_s4  ;;  %v4657_v34 = vrot.slane %v1737_v5, %v4218_v39  ;;  %v4671_v5 = vrot.slane %v1182_v43, %v4218_v39 }
 0x11a   : > { %v4685_v62 = vrot.slane %v6029_v63, %v4381_v26  ;;  %v4699_v43 = vrot.slane %v1170_v32, %v4218_v39  ;;  %v3308_v28 = vcombine.low %v1318_v50, %v1318_v50  ;;  %v4717_v32 = vrot.slane %v4229_v45, %v4218_v39 }
 0x11b   : > { %v1743_v53 = vpack.i.b16 %v1742_v18, %v1741_v35  ;;  %1642 = vrot.lane.b32.xlu1 %v3322_v33, %s3762_s24  ;;  %v1276_v35 = vcombine.low %v4671_v5, %v4654_v6  ;;  %v4702_v18 = vrot.slane %v1176_v11, %v4218_v39  ;;  %v4721_v11 = vrot.slane %v4253_v40, %v4218_v39 }
 0x11c   : > { %v4665_v0 = vpop.permute.xlu1 %1708  ;;  %v4667_v41 = vpop.permute.xlu0 %1704  ;;  %6030 = vst [vmem:[#allocation37_spill] sm:$0xff] %v4685_v62  ;;  %v1734_v40 = vpack.i.b16 %v4619_v16, %v4621_v31 }
 0x11d   : > { %v4674_v33 = vrot.slane %v1743_v53, %v4218_v39  ;;  %v1724_v56 = vshrl.u32 %v4665_v0, 16  ;;  %1652 = vrot.lane.b32.xlu0 %v3441_v59, %s3765_s4  ;;  %v1723_v24 = vshrl.u32 %v4667_v41, 16  ;;  %v3413_v59 = vcombine.high %v4550_v55, %v4550_v55 }
 0x11f   : > { %6028 = vst [vmem:[#allocation36_spill] sm:$0xff] %v4674_v33  ;;  %1100 = vrot.lane.b32.xlu1 %v3425_v19, %s3765_s4  ;;  %v1725_v53 = vpack.i.b16 %v1724_v56, %v1723_v24  ;;  %v4711_v19 = vrot.slane %v1242_v22, %v4381_v26  ;;  %v1862_v55 = vcombine.low %v4657_v34, %v4674_v33 }
 0x120   : > { %v4704_v63 = vpop.permute.xlu1 %1716  ;;  %v4706_v36 = vpop.permute.xlu0 %1712  ;;  %v4725_v56 = vrot.slane %v4263_v58, %v4218_v39  ;;  %v3420_v22 = vcombine.high %v4685_v62, %v4685_v62  ;;  %v1208_v33 = vcombine.low %v4699_v43, %v4702_v18  ;;  %v4739_v58 = vrot.slane %v1276_v35, %v4381_v26 }
 0x121   : > { %v1730_v42 = vshrl.u32 %v4704_v63, 16  ;;  %v1729_v7 = vshrl.u32 %v4706_v36, 16  ;;  %722 = vrot.lane.b32.xlu0 %v3413_v59, %s3765_s4  ;;  %v4731_v24 = vrot.slane %v1725_v53, %v4218_v39  ;;  %v1740_v59 = vpack.i.b16 %v4642_v57, %v4644_v61 }
 0x122   : > { %6031 = vst [vmem:[#allocation38_spill] sm:$0xff] %v4739_v58  ;;  %v3301_v53 = vcombine.low %v4711_v19, %v4711_v19  ;;  %v3432_v61 = vcombine.high %v4739_v58, %v4739_v58  ;;  %v4762_v35 = vrot.slane %v1208_v33, %v4381_v26  ;;  %v6033_v33 = vpack.i.b16 %v4205_v25, %v4181_v60 }
 0x123   : > { %1366 = vrot.lane.b32.xlu1 %v3308_v28, %s3762_s24  ;;  %v1731_v45 = vpack.i.b16 %v1730_v42, %v1729_v7  ;;  %v4749_v42 = vrot.slane %v1862_v55, %v4381_v26  ;;  %v1553_v7 = vcombine.high %v4501_v48, %v4504_v54  ;;  %v4767_v28 = vrot.slane %v1734_v40, %v4218_v39 }
 0x124   : > { %v4770_v55 = vrot.slane %v1740_v59, %v4218_v39  ;;  %v4784_v48 = vrot.slane %v6033_v33, %v4218_v39  ;;  %v6034_v54 = vpack.i.b16 %v4223_v44, %v4199_v20  ;;  %v3428_v60 = vcombine.high %v4762_v35, %v4762_v35 }
 0x125   : > { %v4744_v62 = vrot.slane %v1731_v45, %v4218_v39  ;;  %1060 = vrot.lane.b32.xlu0 %v3420_v22, %s3763_s11  ;;  %v3336_v22 = vcombine.low %v4749_v42, %v4749_v42  ;;  %v6032_v45 = vpack.i.b16 %v4187_v10, %v4174_v27  ;;  %v6035_v27 = vpack.i.b16 %v4234_v49, %v4215_v23 }
 0x126   : > { %v4792_v40 = vrot.slane %v6034_v54, %v4218_v39  ;;  %v1828_v59 = vcombine.low %v4767_v28, %v4770_v55  ;;  %v4807_v20 = vrot.slane %v1553_v7, %v4381_v26  ;;  %v3437_v44 = vcombine.high %v4608_v47, %v4608_v47 }
 0x127   : > { %1331 = vrot.lane.b32.xlu1 %v3301_v53, %s3762_s24  ;;  %v4778_v53 = vrot.slane %v6032_v45, %v4218_v39  ;;  %v4798_v10 = vrot.slane %v6035_v27, %v4218_v39  ;;  %v1794_v25 = vcombine.low %v4731_v24, %v4744_v62  ;;  %v6036_v45 = vcombine.low %v4335_v29, %v4338_v38 }
 0x128   : > { %v4823_v7 = vrot.slane %v1828_v59, %v4381_v26  ;;  %v590_v47 = vcombine.high %v4518_v3, %v4521_v15  ;;  %v4845_v59 = vpop.permute.xlu0 %2277  ;;  %v6037_v15 = vcombine.high %v4484_v14, %v4479_v4  ;;  %v1277_v14 = vcombine.high %v4671_v5, %v4654_v6 }
 0x129   : > { %1371 = vrot.lane.b32.xlu0 %v3432_v61, %s3763_s11  ;;  %v3433_v61 = vcombine.high %v1318_v50, %v1318_v50  ;;  %v4816_v49 = vrot.slane %v1794_v25, %v4381_v26  ;;  %v3325_v50 = vcombine.low %v4807_v20, %v4807_v20  ;;  %v4830_v33 = vrot.slane %v6036_v45, %v4381_v26 }
 0x12a   : > { %v3448_v27 = vcombine.high %v4823_v7, %v4823_v7  ;;  %v3409_v25 = vcombine.high %v4416_v30, %v4416_v30  ;;  %v4848_v3 = vrot.slane %v590_v47, %v4381_v26  ;;  %v1728_v45 = vpack.i.b16 %v4704_v63, %v4706_v36  ;;  %v4872_v47 = vpop.permute.xlu1 %2281 }
 0x12b   : > { %1918 = vrot.lane.b32.xlu1 %v3336_v22, %s3762_s24  ;;  %v3329_v54 = vcombine.low %v4816_v49, %v4816_v49  ;;  %v1485_v6 = vcombine.high %v4559_v52, %v4562_v51  ;;  %v1587_v63 = vcombine.high %v4588_v46, %v4567_v21  ;;  %v6055_v22 = vld [vmem:[#allocation16_spill] sm:$0xff] }
 0x12c   : > { %v3276_v4 = vcombine.low %v4848_v3, %v4848_v3  ;;  %v4892_v5 = vrot.slane %v1728_v45, %v4218_v39 }
 0x12d   : > { %1336 = vrot.lane.b32.xlu0 %v3428_v60, %s3763_s11  ;;  %v3404_v60 = vcombine.high %v4830_v33, %v4830_v33  ;;  %v4915_v46 = vrot.slane %v1587_v63, %v4381_v26  ;;  %v6041_v63 = vld [vmem:[#allocation22_spill] sm:$0xff] }
 0x12f   : > { %1376 = vrot.lane.b32.xlu1 %v3433_v61, %s3765_s4  ;;  %v4854_v61 = vrot.slane %v6037_v15, %v4381_v26  ;;  %v3326_v45 = vcombine.low %v4915_v46, %v4915_v46 }
 0x131   : > { %1617 = vrot.lane.b32.xlu0 %v3437_v44, %s3765_s4  ;;  %v6038_v44 = vcombine.high %v4240_v13, %v4251_v17  ;;  %v4876_v13 = vpop.permute.xlu0 %2285  ;;  %v3421_v17 = vcombine.high %v4411_v8, %v4411_v8  ;;  %v4895_v8 = vrot.slane %v1277_v14, %v4381_v26 }
 0x133   : > { %1657 = vrot.lane.b32.xlu1 %v3325_v50, %s3764_s18  ;;  %v4862_v30 = vrot.slane %v6038_v44, %v4381_v26  ;;  %v1722_v50 = vpack.i.b16 %v4665_v0, %v4667_v41  ;;  %v3311_v21 = vcombine.low %v4895_v8, %v4895_v8 }
 0x135   : > { %1883 = vrot.lane.b32.xlu0 %v3329_v54, %s3762_s24  ;;  %v3284_v54 = vcombine.low %v4854_v61, %v4854_v61  ;;  %v3297_v36 = vcombine.low %v4862_v30, %v4862_v30  ;;  %v4889_v41 = vrot.slane %v1722_v50, %v4218_v39  ;;  %v4905_v52 = vpop.permute.xlu0 %2275 }
 0x137   : > { %1923 = vrot.lane.b32.xlu1 %v3448_v27, %s3763_s11  ;;  %v4900_v27 = vpop.permute.xlu1 %2289  ;;  %v1760_v51 = vcombine.low %v4889_v41, %v4892_v5 }
 0x139   : > { %426 = vrot.lane.b32.xlu0 %v3404_v60, %s3763_s11  ;;  %v3429_v60 = vcombine.high %v4711_v19, %v4711_v19  ;;  %v4922_v44 = vrot.slane %v1760_v51, %v4381_v26  ;;  %v3405_v51 = vcombine.high %v6041_v63, %v6041_v63 }
 0x13b   : > { %466 = vrot.lane.b32.xlu1 %v3409_v25, %s3765_s4  ;;  %v4910_v25 = vrot.slane %v1485_v6, %v4381_v26  ;;  %6039 = vst [vmem:[#allocation39_spill] sm:$0xff] %v4922_v44  ;;  %v4926_v50 = vpop.permute.xlu1 %2279  ;;  %v3449_v6 = vcombine.high %v4749_v42, %v4749_v42  ;;  %v6045_v42 = vld [vmem:[#allocation26_spill] sm:$0xff] }
 0x13d   : > { %727 = vrot.lane.b32.xlu0 %v3276_v4, %s3764_s18  ;;  %v3318_v15 = vcombine.low %v4910_v25, %v4910_v25  ;;  %v4930_v4 = vpop.permute.xlu0 %2283 }
 0x13f   : > { %767 = vrot.lane.b32.xlu1 %v3284_v54, %s3766_s8  ;;  %v6040_v54 = vcombine.high %v4281_v9, %v4273_v12  ;;  %v6042_v9 = vld [vmem:[#allocation13_spill] sm:$0xff] }
 0x141   : > { %1065 = vrot.lane.b32.xlu0 %v3421_v17, %s3765_s4  ;;  %v4940_v17 = vrot.slane %v6040_v54, %v4381_v26  ;;  %v6044_v54 = vld [vmem:[#allocation25_spill] sm:$0xff] }
 0x142   : > { %v6046_v14 = vcombine.high %v6044_v54, %v6045_v42  ;;  %v6048_v42 = vld [vmem:[#allocation31_spill] sm:$0xff] }
 0x143   : > { %1105 = vrot.lane.b32.xlu1 %v3297_v36, %s3764_s18  ;;  %v3444_v36 = vcombine.high %v4922_v44, %v4922_v44  ;;  %v3269_v12 = vcombine.low %v4940_v17, %v4940_v17 }
 0x145   : > { %1341 = vrot.lane.b32.xlu0 %v3429_v60, %s3765_s4  ;;  %v4949_v60 = vpop.permute.xlu1 %2287 }
 0x147   : > { %1381 = vrot.lane.b32.xlu1 %v3311_v21, %s3764_s18  ;;  %v6043_v21 = vld [vmem:[#allocation12_spill] sm:$0xff] }
 0x149   : > { %1622 = vrot.lane.b32.xlu0 %v3318_v15, %s3764_s18  ;;  %v1035_v15 = vcombine.high %v6043_v21, %v6042_v9  ;;  %v1209_v21 = vcombine.high %v4699_v43, %v4702_v18  ;;  %v4981_v54 = vpop.permute.xlu1 %2557 }
 0x14b   : > { %1662 = vrot.lane.b32.xlu1 %v3326_v45, %s3766_s8  ;;  %v4956_v45 = vpop.permute.xlu0 %2553  ;;  %v4973_v9 = vrot.slane %v1035_v15, %v4381_v26  ;;  %v4996_v15 = vrot.slane %v1209_v21, %v4381_v26 }
 0x14d   : > { %1888 = vrot.lane.b32.xlu0 %v3444_v36, %s3763_s11  ;;  %v4962_v36 = vrot.slane %v6046_v14, %v4381_v26  ;;  %v3298_v18 = vcombine.low %v4973_v9, %v4973_v9 }
 0x14f   : > { %1928 = vrot.lane.b32.xlu1 %v3449_v6, %s3765_s4  ;;  %v6047_v6 = vcombine.high %v4299_v1, %v4302_v2  ;;  %v3277_v14 = vcombine.low %v4962_v36, %v4962_v36  ;;  %v3418_v1 = vcombine.high %v6048_v42, %v6048_v42  ;;  %v6049_v2 = vld [vmem:[#allocation33_spill] sm:$0xff]  ;;  %v4987_v19 = vpop.permute.xlu0 %2561 }
 0x151   : > { %431 = vrot.lane.b32.xlu0 %v3405_v51, %s3765_s4  ;;  %v4969_v63 = vrot.slane %v6047_v6, %v4381_v26  ;;  %v6050_v6 = vld [vmem:[#allocation35_spill] sm:$0xff]  ;;  %v6052_v51 = vld [vmem:[#allocation29_spill] sm:$0xff] }
 0x153   : > { %471 = vrot.lane.b32.xlu1 %v3269_v12, %s3764_s18  ;;  %v1311_v12 = vcombine.high %v6050_v6, %v6049_v2  ;;  %v3290_v43 = vcombine.low %v4969_v63, %v4969_v63  ;;  %v5002_v2 = vpop.permute.xlu1 %2565  ;;  %v6051_v6 = vld [vmem:[#allocation28_spill] sm:$0xff] }
 0x154   : > { %v6053_v0 = vcombine.high %v6051_v6, %v6052_v51  ;;  %v6056_v51 = vcombine.high %v4335_v29, %v4338_v38  ;;  %v6058_v29 = vld [vmem:[#allocation14_spill] sm:$0xff] }
 0x155   : > { %732 = vrot.lane.b32.xlu0 %v3277_v14, %s3766_s8  ;;  %v4999_v42 = vrot.slane %v1311_v12, %v4381_v26  ;;  %v5005_v14 = vpop.permute.xlu0 %2551  ;;  %v1829_v12 = vcombine.high %v4767_v28, %v4770_v55 }
 0x156   : > { %v5013_v21 = vrot.slane %v6053_v0, %v4381_v26  ;;  %v3442_v0 = vcombine.high %v4807_v20, %v4807_v20  ;;  %v3445_v20 = vcombine.high %v4816_v49, %v4816_v49 }
 0x157   : > { %772 = vrot.lane.b32.xlu1 %v3418_v1, %s3767_s9  ;;  %v3304_v1 = vcombine.low %v4996_v15, %v4996_v15  ;;  %v5025_v31 = vpop.permute.xlu1 %2555  ;;  %v5030_v28 = vrot.slane %v1829_v12, %v4381_v26  ;;  %v6057_v12 = vld [vmem:[#allocation15_spill] sm:$0xff] }
 0x158   : > { %v3319_v16 = vcombine.low %v5013_v21, %v5013_v21  ;;  %v967_v38 = vcombine.high %v6058_v29, %v6057_v12  ;;  %v3426_v12 = vcombine.high %v4862_v30, %v4862_v30  ;;  %v6061_v29 = vld [vmem:[#allocation34_spill] sm:$0xff] }
 0x159   : > { %1070 = vrot.lane.b32.xlu0 %v3290_v43, %s3764_s18  ;;  %v3312_v43 = vcombine.low %v4999_v42, %v4999_v42  ;;  %v5032_v55 = vpop.permute.xlu0 %2559  ;;  %v3339_v6 = vcombine.low %v5030_v28, %v5030_v28 }
 0x15a   : > { %v5063_v49 = vrot.slane %v967_v38, %v4381_v26 }
 0x15b   : > { %1110 = vrot.lane.b32.xlu1 %v3298_v18, %s3766_s8  ;;  %v6054_v18 = vld [vmem:[#allocation17_spill] sm:$0xff] }
 0x15c   : > { %v401_v23 = vcombine.high %v6055_v22, %v6054_v18  ;;  %v5039_v22 = vrot.slane %v6056_v51, %v4381_v26 }
 0x15d   : > { %1346 = vrot.lane.b32.xlu0 %v3304_v1, %s3764_s18  ;;  %v5059_v18 = vpop.permute.xlu0 %1090 }
 0x15e   : > { %v5043_v1 = vrot.slane %v401_v23, %v4381_v26  ;;  %6059 = vst [vmem:[#allocation22_spill] sm:$0xff] %v5059_v18 }
 0x15f   : > { %1386 = vrot.lane.b32.xlu1 %v3312_v43, %s3766_s8  ;;  %v5054_v43 = vpop.permute.xlu1 %2563 }
 0x160   : > { %v3270_v23 = vcombine.low %v5043_v1, %v5043_v1 }
 0x161   : > { %1627 = vrot.lane.b32.xlu0 %v3319_v16, %s3766_s8  ;;  %v3262_v16 = vcombine.low %v5039_v22, %v5039_v22 }
 0x163   : > { %1667 = vrot.lane.b32.xlu1 %v3442_v0, %s3767_s9  ;;  %v3414_v0 = vcombine.high %v4848_v3, %v4848_v3  ;;  %v5068_v51 = vpop.permute.xlu1 %1055  ;;  %v6060_v3 = vld [vmem:[#allocation32_spill] sm:$0xff] }
 0x164   : > { %v6062_v38 = vcombine.high %v6060_v3, %v6061_v29  ;;  %v6064_v3 = vld [vmem:[#allocation19_spill] sm:$0xff]  ;;  %v6065_v29 = vld [vmem:[#allocation18_spill] sm:$0xff] }
 0x165   : > { %1893 = vrot.lane.b32.xlu0 %v3445_v20, %s3765_s4  ;;  %v3419_v20 = vcombine.high %v4854_v61, %v4854_v61 }
 0x167   : > { %1933 = vrot.lane.b32.xlu1 %v3339_v6, %s3764_s18  ;;  %v5072_v6 = vpop.permute.xlu0 %456  ;;  %v5087_v61 = vpop.permute.xlu1 %461 }
 0x169   : > { %436 = vrot.lane.b32.xlu0 %v3262_v16, %s3764_s18  ;;  %v3291_v16 = vcombine.low %v5063_v49, %v5063_v49 }
 0x16b   : > { %476 = vrot.lane.b32.xlu1 %v3270_v23, %s3766_s8  ;;  %v5084_v23 = vrot.slane %v6062_v38, %v4381_v26  ;;  %v5092_v57 = vpop.permute.xlu0 %1095  ;;  %v3443_v38 = vcombine.high %v4915_v46, %v4915_v46 }
 0x16c   : > { %6063 = vst [vmem:[#allocation13_spill] sm:$0xff] %v5092_v57  ;;  %v2312_v57 = vshrl.u32 %v4876_v13, 16 }
 0x16d   : > { %737 = vrot.lane.b32.xlu0 %v3414_v0, %s3767_s9  ;;  %v1761_v0 = vcombine.high %v4889_v41, %v4892_v5  ;;  %v3305_v30 = vcombine.low %v5084_v23, %v5084_v23  ;;  %v5107_v5 = vpop.permute.xlu1 %752 }
 0x16e   : > { %6066 = vst [vmem:[#allocation12_spill] sm:$0xff] %v5107_v5 }
 0x16f   : > { %777 = vrot.lane.b32.xlu1 %v3419_v20, %s3768_s10  ;;  %v3434_v20 = vcombine.high %v4895_v8, %v4895_v8  ;;  %v5105_v41 = vrot.slane %v1761_v0, %v4381_v26  ;;  %v6067_v8 = vld [vmem:[#allocation36_spill] sm:$0xff] }
 0x171   : > { %1075 = vrot.lane.b32.xlu0 %v3291_v16, %s3766_s8  ;;  %v333_v16 = vcombine.high %v6065_v29, %v6064_v3  ;;  %v5117_v3 = vpop.permute.xlu0 %421  ;;  %v3332_v0 = vcombine.low %v5105_v41, %v5105_v41  ;;  %v3410_v29 = vcombine.high %v4940_v17, %v4940_v17  ;;  %v3427_v17 = vcombine.high %v4973_v9, %v4973_v9 }
 0x172   : > { %v6074_v9 = vcombine.high %v4731_v24, %v4744_v62 }
 0x173   : > { %1115 = vrot.lane.b32.xlu1 %v3426_v12, %s3767_s9  ;;  %v3438_v12 = vcombine.high %v4910_v25, %v4910_v25  ;;  %v5121_v25 = vrot.slane %v333_v16, %v4381_v26 }
 0x175   : > { %1351 = vrot.lane.b32.xlu0 %v3305_v30, %s3766_s8  ;;  %v6068_v30 = vcombine.high %v4657_v34, %v6067_v8  ;;  %v3263_v34 = vcombine.low %v5121_v25, %v5121_v25  ;;  %v5136_v16 = vpop.permute.xlu0 %747 }
 0x177   : > { %1391 = vrot.lane.b32.xlu1 %v3434_v20, %s3767_s9  ;;  %v5115_v44 = vrot.slane %v6068_v30, %v4381_v26  ;;  %v5126_v20 = vpop.permute.xlu1 %1647  ;;  %v3415_v30 = vcombine.high %v4962_v36, %v4962_v36 }
 0x178   : > { %6069 = vst [vmem:[#allocation25_spill] sm:$0xff] %v5126_v20 }
 0x179   : > { %1632 = vrot.lane.b32.xlu0 %v3438_v12, %s3767_s9  ;;  %v3340_v46 = vcombine.low %v5115_v44, %v5115_v44  ;;  %v5144_v8 = vpop.permute.xlu0 %712 }
 0x17b   : > { %1672 = vrot.lane.b32.xlu1 %v3443_v38, %s3768_s10  ;;  %v5138_v12 = vpop.permute.xlu1 %717  ;;  %v3422_v38 = vcombine.high %v4969_v63, %v4969_v63  ;;  %v3430_v63 = vcombine.high %v4996_v15, %v4996_v15  ;;  %v3439_v15 = vcombine.high %v5013_v21, %v5013_v21  ;;  %v3450_v21 = vcombine.high %v5030_v28, %v5030_v28 }
 0x17c   : > { %v2294_v28 = vshrl.u32 %v4905_v52, 16 }
 0x17d   : > { %1898 = vrot.lane.b32.xlu0 %v3332_v0, %s3764_s18 }
 0x17f   : > { %1938 = vrot.lane.b32.xlu1 %v3340_v46, %s3766_s8 }
 0x181   : > { %441 = vrot.lane.b32.xlu0 %v3263_v34, %s3766_s8 }
 0x183   : > { %481 = vrot.lane.b32.xlu1 %v3410_v29, %s3767_s9  ;;  %v3435_v29 = vcombine.high %v4999_v42, %v4999_v42  ;;  %v2313_v42 = vshrl.u32 %v4900_v27, 16 }
 0x185   : > { %v5148_v0 = vpop.permute.xlu1 %1612  ;;  %742 = vrot.lane.b32.xlu0 %v3415_v30, %s3768_s10  ;;  %v2314_v58 = vpack.i.b16 %v2313_v42, %v2312_v57 }
 0x186   : > { %6070 = vst [vmem:[#allocation26_spill] sm:$0xff] %v5148_v0 }
 0x187   : > { %1080 = vrot.lane.b32.xlu1 %v3422_v38, %s3767_s9  ;;  %v5154_v46 = vpop.permute.xlu0 %1607  ;;  %v5170_v38 = vrot.slane %v6074_v9, %v4381_v26  ;;  %v5208_v57 = vrot.slane %v2314_v58, %v4218_v39  ;;  %v2311_v58 = vpack.i.b16 %v4900_v27, %v4876_v13 }
 0x188   : > { %6071 = vst [vmem:[#allocation31_spill] sm:$0xff] %v5154_v46 }
 0x189   : > { %v5156_v34 = vpop.permute.xlu1 %762  ;;  %1120 = vrot.lane.b32.xlu0 %v3427_v17, %s3768_s10  ;;  %v2306_v17 = vshrl.u32 %v4845_v59, 16  ;;  %v3333_v24 = vcombine.low %v5170_v38, %v5170_v38 }
 0x18a   : > { %6072 = vst [vmem:[#allocation33_spill] sm:$0xff] %v5156_v34  ;;  %v2588_v34 = vshrl.u32 %v4987_v19, 16 }
 0x18b   : > { %1356 = vrot.lane.b32.xlu1 %v3430_v63, %s3767_s9  ;;  %v5162_v36 = vpop.permute.xlu0 %757  ;;  %v2307_v63 = vshrl.u32 %v4872_v47, 16 }
 0x18c   : > { %6073 = vst [vmem:[#allocation35_spill] sm:$0xff] %v5162_v36 }
 0x18d   : > { %v5172_v30 = vpop.permute.xlu1 %1642  ;;  %1396 = vrot.lane.b32.xlu0 %v3435_v29, %s3768_s10  ;;  %v2308_v0 = vpack.i.b16 %v2307_v63, %v2306_v17  ;;  %v3406_v29 = vcombine.high %v5039_v22, %v5039_v22  ;;  %v3423_v22 = vcombine.high %v5063_v49, %v5063_v49  ;;  %v2300_v17 = vshrl.u32 %v4930_v4, 16 }
 0x18e   : > { %v2301_v63 = vshrl.u32 %v4949_v60, 16  ;;  %v2305_v49 = vpack.i.b16 %v4872_v47, %v4845_v59  ;;  %v2583_v59 = vshrl.u32 %v4981_v54, 16  ;;  %v2589_v47 = vshrl.u32 %v5002_v2, 16 }
 0x18f   : > { %1637 = vrot.lane.b32.xlu1 %v3439_v15, %s3768_s10  ;;  %v5182_v62 = vpop.permute.xlu0 %1652  ;;  %v3411_v15 = vcombine.high %v5043_v1, %v5043_v1  ;;  %v2295_v1 = vshrl.u32 %v4926_v50, 16 }
 0x190   : > { %6075 = vst [vmem:[#allocation28_spill] sm:$0xff] %v5182_v62 }
 0x191   : > { %v5186_v9 = vpop.permute.xlu1 %1100  ;;  %1903 = vrot.lane.b32.xlu0 %v3333_v24, %s3766_s8  ;;  %v3431_v24 = vcombine.high %v5084_v23, %v5084_v23  ;;  %v2582_v23 = vshrl.u32 %v4956_v45, 16 }
 0x192   : > { %6076 = vst [vmem:[#allocation29_spill] sm:$0xff] %v5186_v9  ;;  %v5201_v9 = vrot.slane %v2308_v0, %v4218_v39 }
 0x193   : > { %1943 = vrot.lane.b32.xlu1 %v3450_v21, %s3767_s9  ;;  %v5196_v18 = vpop.permute.xlu0 %722 }
 0x194   : > { %v2433_v21 = vcombine.low %v5201_v9, %v5208_v57 }
 0x195   : > { %v5198_v46 = vpop.permute.xlu1 %1366  ;;  %446 = vrot.lane.b32.xlu0 %v3406_v29, %s3767_s9  ;;  %v2296_v29 = vpack.i.b16 %v2295_v1, %v2294_v28  ;;  %v3451_v28 = vcombine.high %v5115_v44, %v5115_v44  ;;  %v5250_v1 = vrot.slane %v2305_v49, %v4218_v39 }
 0x196   : > { %6077 = vst [vmem:[#allocation17_spill] sm:$0xff] %v5198_v46  ;;  %v3446_v46 = vcombine.high %v5105_v41, %v5105_v41  ;;  %v3407_v41 = vcombine.high %v5121_v25, %v5121_v25  ;;  %v5257_v44 = vrot.slane %v2433_v21, %v4381_v26 }
 0x197   : > { %486 = vrot.lane.b32.xlu1 %v3411_v15, %s3768_s10  ;;  %v5214_v0 = vpop.permute.xlu0 %1060  ;;  %v2302_v15 = vpack.i.b16 %v2301_v63, %v2300_v17  ;;  %v5253_v63 = vrot.slane %v2311_v58, %v4218_v39  ;;  %v3447_v58 = vcombine.high %v5170_v38, %v5170_v38  ;;  %v2299_v38 = vpack.i.b16 %v4949_v60, %v4930_v4 }
 0x198   : > { %v2570_v4 = vshrl.u32 %v5005_v14, 16  ;;  %v2576_v60 = vshrl.u32 %v5032_v55, 16 }
 0x199   : > { %v5216_v42 = vpop.permute.xlu1 %1331  ;;  %1085 = vrot.lane.b32.xlu0 %v3423_v22, %s3768_s10  ;;  %v6079_v22 = vcombine.low %v4689_v37, %v4717_v32  ;;  %v5263_v25 = vrot.slane %v2302_v15, %v4218_v39  ;;  %v5331_v5 = vrot.slane %v2299_v38, %v4218_v39  ;;  %v2587_v38 = vpack.i.b16 %v5002_v2, %v4987_v19 }
 0x19b   : > { %1361 = vrot.lane.b32.xlu1 %v3431_v24, %s3768_s10  ;;  %v5234_v13 = vpop.permute.xlu0 %1371  ;;  %v5247_v17 = vrot.slane %v6079_v22, %v4381_v26  ;;  %v2584_v24 = vpack.i.b16 %v2583_v59, %v2582_v23  ;;  %v2590_v22 = vpack.i.b16 %v2589_v47, %v2588_v34  ;;  %v2399_v34 = vcombine.low %v5250_v1, %v5253_v63 }
 0x19c   : > { %6078 = vst [vmem:[#allocation16_spill] sm:$0xff] %v5234_v13  ;;  %v2293_v23 = vpack.i.b16 %v4926_v50, %v4905_v52  ;;  %v6082_v59 = vcombine.low %v4778_v53, %v4784_v48  ;;  %v3368_v50 = vcombine.low %v5257_v44, %v5257_v44 }
 0x19d   : > { %v5236_v27 = vpop.permute.xlu1 %1918  ;;  %1908 = vrot.lane.b32.xlu0 %v3446_v46, %s3767_s9  ;;  %v5260_v46 = vrot.slane %v2296_v29, %v4218_v39  ;;  %v3354_v21 = vcombine.low %v5247_v17, %v5247_v17  ;;  %v6081_v29 = vcombine.low %v4721_v11, %v4725_v56 }
 0x19e   : > { %v5291_v47 = vrot.slane %v6082_v59, %v4381_v26  ;;  %v2577_v59 = vshrl.u32 %v5054_v43, 16 }
 0x19f   : > { %1948 = vrot.lane.b32.xlu1 %v3451_v28, %s3768_s10  ;;  %v5265_v13 = vpop.permute.xlu0 %1336  ;;  %v5278_v15 = vrot.slane %v6081_v29, %v4381_v26  ;;  %v2365_v28 = vcombine.low %v5260_v46, %v5263_v25  ;;  %v5299_v29 = vrot.slane %v2590_v22, %v4218_v39 }
 0x1a0   : > { %6083 = vst [vmem:[#allocation14_spill] sm:$0xff] %v5291_v47  ;;  %v3456_v22 = vcombine.high %v5291_v47, %v5291_v47  ;;  %v2578_v20 = vpack.i.b16 %v2577_v59, %v2576_v60 }
 0x1a1   : > { %v5267_v49 = vpop.permute.xlu1 %1376  ;;  %451 = vrot.lane.b32.xlu0 %v3407_v41, %s3768_s10  ;;  %v5296_v41 = vrot.slane %v2584_v24, %v4218_v39  ;;  %v3347_v24 = vcombine.low %v5278_v15, %v5278_v15  ;;  %v5322_v36 = vrot.slane %v2365_v28, %v4381_v26  ;;  %v6088_v28 = vcombine.low %v4792_v40, %v4798_v10 }
 0x1a2   : > { %6080 = vst [vmem:[#allocation15_spill] sm:$0xff] %v5267_v49 }
 0x1a3   : > { %1913 = vrot.lane.b32.xlu1 %v3447_v58, %s3768_s10  ;;  %v5301_v52 = vpop.permute.xlu0 %1617  ;;  %v2571_v58 = vshrl.u32 %v5025_v31, 16  ;;  %v3361_v60 = vcombine.low %v5322_v36, %v5322_v36 }
 0x1a4   : > { %6084 = vst [vmem:[#allocation32_spill] sm:$0xff] %v5301_v52  ;;  %v2709_v52 = vcombine.low %v5296_v41, %v5299_v29 }
 0x1a5   : > { %v5309_v49 = vpop.permute.xlu1 %1657  ;;  %2213 = vrot.lane.b32.xlu0 %v3354_v21, %s3762_s24  ;;  %v5328_v21 = vrot.slane %v2293_v23, %v4218_v39  ;;  %v2581_v23 = vpack.i.b16 %v4981_v54, %v4956_v45 }
 0x1a6   : > { %6085 = vst [vmem:[#allocation34_spill] sm:$0xff] %v5309_v49  ;;  %v5325_v49 = vrot.slane %v2399_v34, %v4381_v26  ;;  %v5341_v34 = vrot.slane %v6088_v28, %v4381_v26 }
 0x1a7   : > { %2489 = vrot.lane.b32.xlu1 %v3368_v50, %s3762_s24  ;;  %v5319_v62 = vpop.permute.xlu0 %1883  ;;  %v2572_v50 = vpack.i.b16 %v2571_v58, %v2570_v4  ;;  %v5352_v58 = vrot.slane %v2709_v52, %v4381_v26  ;;  %v2331_v59 = vcombine.low %v5328_v21, %v5331_v5  ;;  %v5371_v2 = vrot.slane %v2581_v23, %v4218_v39 }
 0x1a8   : > { %6086 = vst [vmem:[#allocation19_spill] sm:$0xff] %v5319_v62  ;;  %6087 = vst [vmem:[#allocation18_spill] sm:$0xff] %v5325_v49  ;;  %v3464_v19 = vcombine.high %v5325_v49, %v5325_v49  ;;  %v3452_v54 = vcombine.high %v5341_v34, %v5341_v34  ;;  %v5374_v52 = vrot.slane %v2587_v38, %v4218_v39 }
 0x1a9   : > { %v5333_v47 = vpop.permute.xlu1 %1923  ;;  %2178 = vrot.lane.b32.xlu0 %v3347_v24, %s3762_s24  ;;  %6089 = vst [vmem:[#allocation36_spill] sm:$0xff] %v5341_v34  ;;  %v5357_v24 = vrot.slane %v2572_v50, %v4218_v39  ;;  %v3382_v50 = vcombine.low %v5352_v58, %v5352_v58  ;;  %v3457_v23 = vcombine.high %v5247_v17, %v5247_v17 }
 0x1aa   : > { %v2675_v38 = vcombine.low %v5371_v2, %v5374_v52  ;;  %v2569_v49 = vpack.i.b16 %v5025_v31, %v5005_v14  ;;  %v2575_v62 = vpack.i.b16 %v5054_v43, %v5032_v55  ;;  %v3465_v31 = vcombine.high %v5257_v44, %v5257_v44 }
 0x1ab   : > { %2218 = vrot.lane.b32.xlu1 %v3456_v22, %s3763_s11  ;;  %v5347_v4 = vpop.permute.xlu0 %426  ;;  %v5360_v22 = vrot.slane %v2578_v20, %v4218_v39  ;;  %v6092_v44 = vcombine.high %v4778_v53, %v4784_v48  ;;  %v1967_v48 = vsel %vm488_vm6, %v4823_v7, %v5236_v27  ;;  %v491_v27 = vsel %vm488_vm6, %v4830_v33, %v5117_v3 }
 0x1ac   : > { %v5413_v14 = vrot.slane %v2675_v38, %v4381_v26  ;;  %v5416_v55 = vrot.slane %v2569_v49, %v4218_v39  ;;  %v5419_v43 = vrot.slane %v2575_v62, %v4218_v39  ;;  %v3453_v49 = vcombine.high %v5278_v15, %v5278_v15  ;;  %v6093_v15 = vld [vmem:[#allocation20_spill] sm:$0xff] }
 0x1ad   : > { %v5362_v45 = vpop.permute.xlu1 %466  ;;  %2454 = vrot.lane.b32.xlu0 %v3361_v60, %s3762_s24  ;;  %v2641_v28 = vcombine.low %v5357_v24, %v5360_v22  ;;  %v2400_v39 = vcombine.high %v5250_v1, %v5253_v63 }
 0x1ae   : > { %6091 = vst [vmem:[#allocation41_spill] sm:$0xff] %v5413_v14  ;;  %v3472_v38 = vcombine.high %v5413_v14, %v5413_v14 }
 0x1af   : > { %2494 = vrot.lane.b32.xlu1 %v3464_v19, %s3763_s11  ;;  %v5376_v20 = vpop.permute.xlu0 %727  ;;  %v5385_v19 = vrot.slane %v2331_v59, %v4381_v26  ;;  %v5404_v17 = vrot.slane %v2641_v28, %v4381_v26  ;;  %v5455_v63 = vrot.slane %v2400_v39, %v4381_v26 }
 0x1b1   : > { %v5382_v60 = vpop.permute.xlu1 %767  ;;  %6090 = vst [vmem:[#allocation40_spill] sm:$0xff] %v5385_v19  ;;  %2765 = vrot.lane.b32.xlu0 %v3382_v50, %s3762_s24  ;;  %v3460_v50 = vcombine.high %v5385_v19, %v5385_v19  ;;  %v3371_v3 = vcombine.low %v5455_v63, %v5455_v63 }
 0x1b3   : > { %2183 = vrot.lane.b32.xlu1 %v3452_v54, %s3763_s11  ;;  %v5393_v34 = vpop.permute.xlu0 %1065 }
 0x1b5   : > { %v5399_v59 = vpop.permute.xlu1 %1105  ;;  %2223 = vrot.lane.b32.xlu0 %v3457_v23, %s3765_s4  ;;  %v3375_v23 = vcombine.low %v5404_v17, %v5404_v17 }
 0x1b7   : > { %2459 = vrot.lane.b32.xlu1 %v3460_v50, %s3763_s11  ;;  %v5408_v54 = vpop.permute.xlu0 %1341  ;;  %v5430_v50 = vrot.slane %v6092_v44, %v4381_v26  ;;  %v1969_v44 = vsel %vm492_vm7, %v1967_v48, %v5333_v47 }
 0x1b9   : > { %v5421_v28 = vpop.permute.xlu1 %1381  ;;  %2499 = vrot.lane.b32.xlu0 %v3465_v31, %s3765_s4  ;;  %v2607_v31 = vcombine.low %v5416_v55, %v5419_v43  ;;  %v3357_v53 = vcombine.low %v5430_v50, %v5430_v50 }
 0x1bb   : > { %2730 = vrot.lane.b32.xlu1 %v3375_v23, %s3762_s24  ;;  %v5437_v62 = vpop.permute.xlu0 %1622  ;;  %v512_v23 = vsel %vm488_vm6, %v6093_v15, %v5072_v6  ;;  %v5465_v14 = vrot.slane %v2607_v31, %v4381_v26  ;;  %v6094_v6 = vld [vmem:[#allocation27_spill] sm:$0xff] }
 0x1bc   : > { %v781_v47 = vsel %vm488_vm6, %v6094_v6, %v5144_v8  ;;  %v514_v31 = vsel %vm492_vm7, %v512_v23, %v5087_v61  ;;  %v2332_v8 = vcombine.high %v5328_v21, %v5331_v5  ;;  %v6096_v5 = vcombine.high %v4689_v37, %v4717_v32 }
 0x1bd   : > { %v5443_v19 = vpop.permute.xlu1 %1662  ;;  %2770 = vrot.lane.b32.xlu0 %v3472_v38, %s3763_s11  ;;  %v516_v48 = vsel %vm495_vm8, %v514_v31, %v5362_v45  ;;  %v3468_v61 = vcombine.high %v5465_v14, %v5465_v14  ;;  %v3473_v37 = vcombine.high %v5352_v58, %v5352_v58 }
 0x1be   : > { %v5509_v21 = vrot.slane %v6096_v5, %v4381_v26 }
 0x1bf   : > { %2188 = vrot.lane.b32.xlu1 %v3453_v49, %s3765_s4  ;;  %v5452_v1 = vpop.permute.xlu0 %1888  ;;  %v3461_v49 = vcombine.high %v5322_v36, %v5322_v36  ;;  %v6095_v36 = vcombine.high %v4792_v40, %v4798_v10 }
 0x1c1   : > { %v1929_v38 = vpop.permute.xlu1 %1928  ;;  %2228 = vrot.lane.b32.xlu0 %v3357_v53, %s3764_s18  ;;  %v5482_v39 = vrot.slane %v6095_v36, %v4381_v26  ;;  %v494_v53 = vsel %vm492_vm7, %v491_v27, %v5347_v4  ;;  %v783_v4 = vsel %vm492_vm7, %v781_v47, %v5138_v12  ;;  %v2434_v12 = vcombine.high %v5201_v9, %v5208_v57  ;;  %v6097_v27 = vld [vmem:[#allocation37_spill] sm:$0xff] }
 0x1c2   : > { %v5468_v7 = vsel %vm495_vm8, %v1969_v44, %v1929_v38  ;;  %v785_v45 = vsel %vm495_vm8, %v783_v4, %v5196_v18  ;;  %v1124_v9 = vsel %vm488_vm6, %v6097_v27, %v5068_v51  ;;  %v3358_v57 = vcombine.low %v5509_v21, %v5509_v21 }
 0x1c3   : > { %2464 = vrot.lane.b32.xlu1 %v3461_v49, %s3765_s4  ;;  %v432_v33 = vpop.permute.xlu0 %431  ;;  %v3350_v23 = vcombine.low %v5482_v39, %v5482_v39  ;;  %v787_v44 = vsel %vm498_vm9, %v785_v45, %v5376_v20  ;;  %v5528_v49 = vrot.slane %v2332_v8, %v4381_v26  ;;  %v1126_v58 = vsel %vm492_vm7, %v1124_v9, %v5214_v0 }
 0x1c4   : > { %v5495_v40 = vsel %vm495_vm8, %v494_v53, %v432_v33  ;;  %v2676_v20 = vcombine.high %v5371_v2, %v5374_v52  ;;  %v1128_v6 = vsel %vm495_vm8, %v1126_v58, %v5393_v34  ;;  %v5544_v36 = vrot.slane %v2434_v12, %v4381_v26 }
 0x1c5   : > { %v472_v10 = vpop.permute.xlu1 %471  ;;  %2504 = vrot.lane.b32.xlu0 %v3371_v3, %s3764_s18  ;;  %v3364_v0 = vcombine.low %v5528_v49, %v5528_v49  ;;  %v1400_v53 = vsel %vm488_vm6, %v4762_v35, %v5216_v42  ;;  %v6098_v2 = vcombine.high %v4721_v11, %v4725_v56  ;;  %v3469_v11 = vcombine.high %v5404_v17, %v5404_v17 }
 0x1c6   : > { %v5502_v15 = vsel %vm498_vm9, %v516_v48, %v472_v10  ;;  %v1402_v34 = vsel %vm492_vm7, %v1400_v53, %v5265_v13  ;;  %v3372_v35 = vcombine.low %v5544_v36, %v5544_v36  ;;  %v5571_v42 = vrot.slane %v2676_v20, %v4381_v26 }
 0x1c7   : > { %2735 = vrot.lane.b32.xlu1 %v3468_v61, %s3763_s11  ;;  %v733_v38 = vpop.permute.xlu0 %732  ;;  %v5564_v52 = vrot.slane %v6098_v2, %v4381_v26  ;;  %v1404_v33 = vsel %vm495_vm8, %v1402_v34, %v5408_v54  ;;  %v2366_v13 = vcombine.high %v5260_v46, %v5263_v25  ;;  %v2608_v25 = vcombine.high %v5416_v55, %v5419_v43  ;;  %s3669_s11 = sshll.u32 %s3770_s20, 4  ;;  %s3670_s11 = int_to_ptr.vmem [resolvable:$false] %s3669_s11 }
 0x1c8   : > { %v5523_v32 = vsel %vm501_vm10, %v787_v44, %v733_v38  ;;  %v3385_v46 = vcombine.low %v5571_v42, %v5571_v42  ;;  %v3458_v17 = vcombine.high %v5430_v50, %v5430_v50  ;;  %v2710_v4 = vcombine.high %v5296_v41, %v5299_v29  ;;  %p3672_p3 = scmp.lt.s32.totalorder %s5899_s29, %s3670_s11 }
 0x1c9   : > { %v5525_v18 = vpop.permute.xlu1 %772  ;;  %2775 = vrot.lane.b32.xlu0 %v3473_v37, %s3765_s4  ;;  %v3351_v56 = vcombine.low %v5564_v52, %v5564_v52  ;;  %v5593_v61 = vrot.slane %v2366_v13, %v4381_v26  ;;  %v5608_v43 = vrot.slane %v2608_v25, %v4381_v26  ;;  %v3454_v44 = vcombine.high %v5482_v39, %v5482_v39 }
 0x1ca   : > { %v5617_v41 = vrot.slane %v2710_v4, %v4381_v26  ;;  %v2642_v37 = vcombine.high %v5357_v24, %v5360_v22  ;;  %v3459_v9 = vcombine.high %v5509_v21, %v5509_v21  ;;  %v6100_v22 = vld [vmem:[#allocation23_spill] sm:$0xff]  ;;  %v6101_v21 = vld [vmem:[#allocation25_spill] sm:$0xff] }
 0x1cb   : > { %2193 = vrot.lane.b32.xlu1 %v3350_v23, %s3764_s18  ;;  %v1071_v47 = vpop.permute.xlu0 %1070  ;;  %v3365_v55 = vcombine.low %v5593_v61, %v5593_v61  ;;  %v3466_v23 = vcombine.high %v5455_v63, %v5455_v63  ;;  %v3378_v12 = vcombine.low %v5608_v43, %v5608_v43  ;;  %v6106_v4 = vld [vmem:[#allocation33_spill] sm:$0xff] }
 0x1cc   : > { %v5547_v51 = vsel %vm498_vm9, %v1128_v6, %v1071_v47  ;;  %v3386_v63 = vcombine.low %v5617_v41, %v5617_v41  ;;  %v3462_v6 = vcombine.high %v5528_v49, %v5528_v49  ;;  %v2656_v24 = vrot.slane %v2642_v37, %v4381_v26  ;;  %v6102_v26 = vld [vmem:[#allocation12_spill] sm:$0xff] }
 0x1cd   : > { %v5549_v31 = vpop.permute.xlu1 %1110  ;;  %2233 = vrot.lane.b32.xlu0 %v3358_v57, %s3766_s8  ;;  %v6099_v57 = vld [vmem:[#allocation24_spill] sm:$0xff]  ;;  %v796_v47 = vsel %vm488_vm6, %v6100_v22, %v5136_v16  ;;  %v3467_v49 = vcombine.high %v5544_v36, %v5544_v36  ;;  %v3463_v37 = vcombine.high %v5593_v61, %v5593_v61  ;;  %v257_v61 = vld [vmem:[#allocation7] sm:$0xff] }
 0x1ce   : > { %v1691_v39 = vsel %vm488_vm6, %v6099_v57, %v5172_v30  ;;  %v3769_v30 = vmov 0   ;;  %v798_v16 = vsel %vm492_vm7, %v796_v47, %v6102_v26  ;;  %v3379_v2 = vcombine.low %v2656_v24, %v2656_v24  ;;  %v6107_v47 = vld [vmem:[#allocation31_spill] sm:$0xff]  ;;  %v6110_v26 = vld [vmem:[#allocation21_spill] sm:$0xff] }
 0x1cf   : > { %2469 = vrot.lane.b32.xlu1 %v3364_v0, %s3764_s18  ;;  %v1347_v3 = vpop.permute.xlu0 %1346  ;;  %v1693_v0 = vsel %vm492_vm7, %v1691_v39, %v6101_v21  ;;  %2897 = vmatprep.mubr.bf16.mxu0 %v3769_v30  ;;  %v6108_v21 = vld [vmem:[#allocation30_spill] sm:$0xff] }
 0x1d0   : > { %v5576_v8 = vsel %vm498_vm9, %v1404_v33, %v1347_v3  ;;  %2969 = vmatprep.mubr.bf16.mxu1 %v3769_v30  ;;  %3578 = vset.pattern.permute.xlu0 %v3769_v30  ;;  %v6103_v33 = vld [vmem:[#allocation35_spill] sm:$0xff] }
 0x1d1   : > { %v5578_v48 = vpop.permute.xlu1 %1386  ;;  %2509 = vrot.lane.b32.xlu0 %v3372_v35, %s3766_s8  ;;  %v800_v3 = vsel %vm495_vm8, %v798_v16, %v6103_v33  ;;  %v6104_v35 = vld [vmem:[#allocation28_spill] sm:$0xff] }
 0x1d2   : > { %v1695_v13 = vsel %vm495_vm8, %v1693_v0, %v6104_v35  ;;  %v1676_v0 = vsel %vm488_vm6, %v6108_v21, %v6107_v47  ;;  %v6113_v33 = vld [vmem:[#allocation16_spill] sm:$0xff] }
 0x1d3   : > { %2740 = vrot.lane.b32.xlu1 %v3469_v11, %s3765_s4  ;;  %v5586_v54 = vpop.permute.xlu0 %1627  ;;  %v6105_v11 = vld [vmem:[#allocation34_spill] sm:$0xff] }
 0x1d4   : > { %v1697_v36 = vsel %vm498_vm9, %v1695_v13, %v6105_v11  ;;  %v6114_v13 = vld [vmem:[#allocation15_spill] sm:$0xff] }
 0x1d5   : > { %v1668_v10 = vpop.permute.xlu1 %1667  ;;  %2780 = vrot.lane.b32.xlu0 %v3385_v46, %s3764_s18  ;;  %v1699_v46 = vsel %vm501_vm10, %v1697_v36, %v5443_v19  ;;  %v6115_v36 = vld [vmem:[#allocation26_spill] sm:$0xff] }
 0x1d7   : > { %2198 = vrot.lane.b32.xlu1 %v3351_v56, %s3766_s8  ;;  %v5601_v5 = vpop.permute.xlu0 %1893  ;;  %v3455_v56 = vcombine.high %v5564_v52, %v5564_v52 }
 0x1d9   : > { %v5603_v45 = vpop.permute.xlu1 %1933  ;;  %2238 = vrot.lane.b32.xlu0 %v3458_v17, %s3767_s9  ;;  %v3474_v17 = vcombine.high %v5571_v42, %v5571_v42 }
 0x1db   : > { %2474 = vrot.lane.b32.xlu1 %v3365_v55, %s3766_s8  ;;  %v5612_v50 = vpop.permute.xlu0 %436  ;;  %v802_v55 = vsel %vm498_vm9, %v800_v3, %v6106_v4 }
 0x1dd   : > { %v5619_v29 = vpop.permute.xlu1 %476  ;;  %2514 = vrot.lane.b32.xlu0 %v3466_v23, %s3767_s9  ;;  %v1701_v23 = vsel %vm504_vm11, %v1699_v46, %v1668_v10 }
 0x1df   : > { %2745 = vrot.lane.b32.xlu1 %v3378_v12, %s3764_s18  ;;  %v5627_v38 = vpop.permute.xlu0 %737  ;;  %s3671_s18 = scalar_lea.vmem %s3670_s11, 2048 }
 0x1e0   : > { %p3673_p5 = scmp.lt.s32.totalorder %s3671_s18, %s3665_s22 }
 0x1e1   : > { %v778_v27 = vpop.permute.xlu1 %777  ;;  %2785 = vrot.lane.b32.xlu0 %v3386_v63, %s3766_s8 }
 0x1e2   : > { %p3674_p9 = por %p3673_p5, %p3672_p3 }
 0x1e3   : > { %2203 = vrot.lane.b32.xlu1 %v3454_v44, %s3767_s9  ;;  %v5640_v58 = vpop.permute.xlu0 %1075  ;;  %v804_v44 = vsel %vm501_vm10, %v802_v55, %v5382_v60  ;;  %v6117_v55 = vld [vmem:[#allocation32_spill] sm:$0xff] }
 0x1e4   : > { %v806_v19 = vsel %vm504_vm11, %v804_v44, %v5525_v18  ;;  %v6118_v44 = vld [vmem:[#allocation29_spill] sm:$0xff]  ;;  %p3675_p2 = pnand %p3674_p9, %p3668_p10 }
 0x1e5   : > { %v5642_v20 = vpop.permute.xlu1 %1115  ;;  %2243 = vrot.lane.b32.xlu0 %v3459_v9, %s3768_s10  ;;  %v5688_v42 = vsel %vm507_vm12, %v806_v19, %v778_v27  ;;  %v3470_v9 = vcombine.high %v5608_v43, %v5608_v43  ;;  %v3475_v27 = vcombine.high %v5617_v41, %v5617_v41  ;;  %v6112_v41 = vld [vmem:[#allocation38_spill] sm:$0xff] }
 0x1e7   : > { %2479 = vrot.lane.b32.xlu1 %v3462_v6, %s3767_s9  ;;  %v5655_v53 = vpop.permute.xlu0 %1351  ;;  %v3471_v6 = vcombine.high %v2656_v24, %v2656_v24 }
 0x1e9   : > { %v1392_v34 = vpop.permute.xlu1 %1391  ;;  %2519 = vrot.lane.b32.xlu0 %v3467_v49, %s3768_s10  ;;  %v6109_v49 = vld [vmem:[#allocation22_spill] sm:$0xff] }
 0x1ea   : > { %v1139_v16 = vsel %vm488_vm6, %v6110_v26, %v6109_v49 }
 0x1eb   : > { %2750 = vrot.lane.b32.xlu1 %v3379_v2, %s3766_s8  ;;  %v1633_v25 = vpop.permute.xlu0 %1632  ;;  %v6111_v2 = vld [vmem:[#allocation17_spill] sm:$0xff] }
 0x1ec   : > { %v1415_v24 = vsel %vm488_vm6, %v6112_v41, %v6111_v2  ;;  %v520_v41 = vsel %vm501_vm10, %v5502_v15, %v5619_v29 }
 0x1ed   : > { %v1673_v12 = vpop.permute.xlu1 %1672  ;;  %2790 = vrot.lane.b32.xlu0 %v3474_v17, %s3767_s9  ;;  %v1417_v3 = vsel %vm492_vm7, %v1415_v24, %v6113_v33  ;;  %v6116_v17 = vld [vmem:[#allocation13_spill] sm:$0xff] }
 0x1ee   : > { %v1703_v52 = vsel %vm507_vm12, %v1701_v23, %v1673_v12  ;;  %v1419_v11 = vsel %vm495_vm8, %v1417_v3, %v6114_v13  ;;  %v1141_v4 = vsel %vm492_vm7, %v1139_v16, %v6116_v17  ;;  %v1408_v13 = vsel %vm501_vm10, %v5576_v8, %v5655_v53 }
 0x1ef   : > { %v2911_v63 = vrot.slane %v1703_v52, 6  ;;  %2208 = vrot.lane.b32.xlu1 %v3455_v56, %s3768_s10  ;;  %v5690_v10 = vpop.permute.xlu0 %1898  ;;  %v1678_v56 = vsel %vm492_vm7, %v1676_v0, %v6115_v36  ;;  %v1421_v12 = vsel %vm498_vm9, %v1419_v11, %v5421_v28  ;;  %v1143_v52 = vsel %vm495_vm8, %v1141_v4, %v6118_v44 }
 0x1f0   : > { %v1680_v23 = vsel %vm495_vm8, %v1678_v56, %v6117_v55  ;;  %v1132_v36 = vsel %vm501_vm10, %v5547_v51, %v5640_v58  ;;  %v1973_v17 = vsel %vm498_vm9, %v5468_v7, %v5603_v45  ;;  %v6119_v55 = vld [vmem:[#allocation19_spill] sm:$0xff] }
 0x1f1   : > { %v5694_v60 = vpop.permute.xlu1 %1938  ;;  %v2921_v57 = vsel %vm2839_vm13, %v5688_v42, %v2911_v63  ;;  %2484 = vrot.lane.b32.xlu0 %v3463_v37, %s3768_s10  ;;  %v1682_v19 = vsel %vm498_vm9, %v1680_v23, %v5437_v62  ;;  %v1423_v63 = vsel %vm501_vm10, %v1421_v12, %v5578_v48  ;;  %v1145_v37 = vsel %vm498_vm9, %v1143_v52, %v5399_v59 }
 0x1f2   : > { %v1147_v28 = vsel %vm501_vm10, %v1145_v37, %v5549_v31  ;;  %v791_v31 = vsel %vm504_vm11, %v5523_v32, %v5627_v38  ;;  %v2830_v32 = vrot.slane %v5688_v42, 6  ;;  %v1975_v12 = vsel %vm501_vm10, %v1973_v17, %v5694_v60 }
 0x1f3   : > { %2755 = vrot.lane.b32.xlu1 %v3470_v9, %s3767_s9  ;;  %v5702_v18 = vpop.permute.xlu0 %441  ;;  %v1684_v9 = vsel %vm501_vm10, %v1682_v19, %v5586_v54  ;;  %v1149_v48 = vsel %vm504_vm11, %v1147_v28, %v5642_v20  ;;  %v500_v60 = vsel %vm498_vm9, %v5495_v40, %v5612_v50 }
 0x1f4   : > { %v503_v37 = vsel %vm501_vm10, %v500_v60, %v5702_v18 }
 0x1f5   : > { %v482_v39 = vpop.permute.xlu1 %481  ;;  %2795 = vrot.lane.b32.xlu0 %v3475_v27, %s3768_s10  ;;  %v1425_v27 = vsel %vm504_vm11, %v1423_v63, %v1392_v34 }
 0x1f6   : > { %v522_v38 = vsel %vm504_vm11, %v520_v41, %v482_v39  ;;  %v2933_v41 = vld [vmem:[#allocation5 + $0x4] sm:$0xf] }
 0x1f7   : > { %2760 = vrot.lane.b32.xlu1 %v3471_v6, %s3768_s10  ;;  %v743_v43 = vpop.permute.xlu0 %742 }
 0x1f8   : > { %v793_v0 = vsel %vm507_vm12, %v791_v31, %v743_v43 }
 0x1f9   : > { %v1081_v22 = vpop.permute.xlu1 %1080  ;;  %2859 = vperm.xlu0 %3578, %v257_v61   ;;  %v1686_v61 = vsel %vm504_vm11, %v1684_v9, %v1633_v25 }
 0x1fa   : > { %v1134_v8 = vsel %vm504_vm11, %v1132_v36, %v1081_v22 }
 0x1fb   : > { %v1121_v35 = vpop.permute.xlu0 %1120 }
 0x1fc   : > { %v1151_v25 = vsel %vm507_vm12, %v1149_v48, %v1121_v35 }
 0x1fd   : > { %v1357_v46 = vpop.permute.xlu1 %1356  ;;  %v2834_v43 = vrot.slane %v1151_v25, 4 }
 0x1fe   : > { %v1410_v29 = vsel %vm504_vm11, %v1408_v13, %v1357_v46  ;;  %v6120_v46 = vld [vmem:[#allocation39_spill] sm:$0xff] }
 0x1ff   : > { %v1397_v6 = vpop.permute.xlu0 %1396  ;;  %v1952_v23 = vsel %vm488_vm6, %v6120_v46, %v6119_v55 }
 0x200   : > { %v5744_v47 = vsel %vm507_vm12, %v1425_v27, %v1397_v6  ;;  %v1954_v44 = vsel %vm492_vm7, %v1952_v23, %v5452_v1  ;;  %v2829_v6 = vrot.slane %v793_v0, 6 }
 0x201   : > { %v1638_v62 = vpop.permute.xlu1 %1637  ;;  %v2913_v59 = vrot.slane %v5744_v47, 4  ;;  %v2982_v54 = vrot.slane %v5744_v47, 6  ;;  %v2838_v35 = vrot.slane %v5744_v47, 2  ;;  %v1956_v19 = vsel %vm495_vm8, %v1954_v44, %v5601_v5 }
 0x202   : > { %v1688_v34 = vsel %vm507_vm12, %v1686_v61, %v1638_v62  ;;  %v1958_v1 = vsel %vm498_vm9, %v1956_v19, %v5690_v10 }
 0x203   : > { %v2910_v21 = vrot.slane %v1688_v34, 6  ;;  %v1904_v49 = vpop.permute.xlu0 %1903  ;;  %v2925_v26 = vsel %vm2844_vm14, %v2921_v57, %v2913_v59  ;;  %v5758_v20 = vsel %vm2839_vm13, %v1151_v25, %v2982_v54 }
 0x204   : > { %v1960_v28 = vsel %vm501_vm10, %v1958_v1, %v1904_v49 }
 0x205   : > { %v1944_v16 = vpop.permute.xlu1 %1943  ;;  %v2919_v2 = vsel %vm2839_vm13, %v793_v0, %v2910_v21 }
 0x206   : > { %v1977_v52 = vsel %vm504_vm11, %v1975_v12, %v1944_v16 }
 0x207   : > { %v447_v24 = vpop.permute.xlu0 %446 }
 0x208   : > { %v506_v61 = vsel %vm504_vm11, %v503_v37, %v447_v24  ;;  %v6122_v37 = vld [vmem:[#allocation18_spill] sm:$0xff] }
 0x209   : > { %v487_v33 = vpop.permute.xlu1 %486 }
 0x20a   : > { %v524_v3 = vsel %vm507_vm12, %v522_v38, %v487_v33 }
 0x20b   : > { %v2843_v57 = vsel %vm2839_vm13, %v524_v3, %v2830_v32  ;;  %v1086_v11 = vpop.permute.xlu0 %1085 }
 0x20c   : > { %v2848_v15 = vsel %vm2844_vm14, %v2843_v57, %v2834_v43  ;;  %v1136_v51 = vsel %vm507_vm12, %v1134_v8, %v1086_v11 }
 0x20d   : > { %v1362_v42 = vpop.permute.xlu1 %1361  ;;  %v2854_v39 = vsel %vm2849_vm15, %v2848_v15, %v2838_v35  ;;  %v2833_v5 = vrot.slane %v1136_v51, 4 }
 0x20e   : > { %v1412_v56 = vsel %vm507_vm12, %v1410_v29, %v1362_v42  ;;  %2865 = vmatprep.subr.bf16.mxu0 %v2854_v39 }
 0x20f   : > { %v2912_v53 = vrot.slane %v1412_v56, 4  ;;  %v2981_v4 = vrot.slane %v1412_v56, 6  ;;  %v1909_v58 = vpop.permute.xlu0 %1908  ;;  %v2837_v34 = vrot.slane %v1412_v56, 2 }
 0x210   : > { %v1962_v48 = vsel %vm504_vm11, %v1960_v28, %v1909_v58 }
 0x211   : > { %v1949_v7 = vpop.permute.xlu1 %1948  ;;  %v2923_v45 = vsel %vm2844_vm14, %v2919_v2, %v2912_v53  ;;  %v5794_v22 = vsel %vm2839_vm13, %v1136_v51, %v2981_v4  ;;  %v2856_v2 = vld [vmem:[#allocation5] sm:$0xf] }
 0x212   : > { %v1979_v63 = vsel %vm507_vm12, %v1977_v52, %v1949_v7  ;;  %v6121_v52 = vld [vmem:[#allocation14_spill] sm:$0xff] }
 0x213   : > { %v2917_v9 = vrot.slane %v1979_v63, 2  ;;  %v3055_v27 = vrot.slane %v1979_v63, 6  ;;  %v452_v62 = vpop.permute.xlu0 %451 }
 0x214   : > { %v509_v40 = vsel %vm507_vm12, %v506_v61, %v452_v62 }
 0x215   : > { %v1914_v50 = vpop.permute.xlu1 %1913  ;;  %v2930_v59 = vsel %vm2849_vm15, %v2925_v26, %v2917_v9  ;;  %v5813_v10 = vsel %vm2839_vm13, %v5744_v47, %v3055_v27  ;;  %v2841_v18 = vsel %vm2839_vm13, %v509_v40, %v2829_v6 }
 0x216   : > { %v1964_v54 = vsel %vm507_vm12, %v1962_v48, %v1914_v50  ;;  %2937 = vmatprep.subr.bf16.mxu1 %v2930_v59  ;;  %v2846_v21 = vsel %vm2844_vm14, %v2841_v18, %v2833_v5  ;;  %v6123_v18 = vld [vmem:[#allocation36_spill] sm:$0xff] }
 0x217   : > { %v2916_v31 = vrot.slane %v1964_v54, 2  ;;  %v3054_v25 = vrot.slane %v1964_v54, 6  ;;  %v2214_v0 = vpop.permute.xlu0 %2213  ;;  %v2851_v49 = vsel %vm2849_vm15, %v2846_v21, %v2837_v34 }
 0x218   : > { %2866 = vmatpush1.bf16.msra.mxu0 %v2851_v49  ;;  %v2262_v7 = vsel %vm488_vm6, %v6121_v52, %v2214_v0 }
 0x219   : > { %v5820_v16 = vsel %vm2839_vm13, %v1412_v56, %v3054_v25  ;;  %v2490_v26 = vpop.permute.xlu1 %2489  ;;  %v2927_v47 = vsel %vm2849_vm15, %v2923_v45, %v2916_v31 }
 0x21a   : > { %2938 = vmatpush1.bf16.msra.mxu1 %v2927_v47  ;;  %v2538_v9 = vsel %vm488_vm6, %v6122_v37, %v2490_v26  ;;  %v6124_v47 = vld [vmem:[#allocation40_spill] sm:$0xff] }
 0x21b   : > { %v2179_v24 = vpop.permute.xlu0 %2178  ;;  %3389 = vmatmul.mubr.msk.bf16.vlgmr.msra.gmra.mrb[0].mxu0 %vm488_vm6, %v2856_v2 }
 0x21c   : > { %3042 = vmatprep.mubr.bf16.mxu0 %v3769_v30  ;;  %v2247_v54 = vsel %vm488_vm6, %v6123_v18, %v2179_v24 }
 0x21d   : > { %v2219_v32 = vpop.permute.xlu1 %2218  ;;  %3390 = vmatmul.mubr.msk.bf16.vlgmr.msra.gmra.mrb[0].mxu1 %vm488_vm6, %v2933_v41 }
 0x21e   : > { %3113 = vmatprep.mubr.bf16.mxu1 %v3769_v30  ;;  %v2264_v45 = vsel %vm492_vm7, %v2262_v7, %v2219_v32 }
 0x21f   : > { %v2455_v38 = vpop.permute.xlu0 %2454 }
 0x220   : > { %v2523_v2 = vsel %vm488_vm6, %v6124_v47, %v2455_v38 }
 0x221   : > { %v2495_v33 = vpop.permute.xlu1 %2494 }
 0x222   : > { %v2540_v6 = vsel %vm492_vm7, %v2538_v9, %v2495_v33  ;;  %v3006_v9 = vld [vmem:[#allocation5 + $0x8] sm:$0xf] }
 0x223   : > { %v5827_v43 = vpop.permute.xlu0 %2765 }
 0x225   : > { %v2184_v3 = vpop.permute.xlu1 %2183 }
 0x226   : > { %v2249_v25 = vsel %vm492_vm7, %v2247_v54, %v2184_v3 }
 0x227   : > { %v2224_v57 = vpop.permute.xlu0 %2223 }
 0x228   : > { %v2266_v60 = vsel %vm495_vm8, %v2264_v45, %v2224_v57 }
 0x229   : > { %v2460_v35 = vpop.permute.xlu1 %2459 }
 0x22a   : > { %v2525_v24 = vsel %vm492_vm7, %v2523_v2, %v2460_v35 }
 0x22b   : > { %v2500_v13 = vpop.permute.xlu0 %2499 }
 0x22c   : > { %v2542_v5 = vsel %vm495_vm8, %v2540_v6, %v2500_v13 }
 0x22d   : > { %v2731_v11 = vpop.permute.xlu1 %2730 }
 0x22f   : > { %v2771_v15 = vpop.permute.xlu0 %2770 }
 0x231   : > { %v2189_v29 = vpop.permute.xlu1 %2188 }
 0x232   : > { %v2251_v49 = vsel %vm495_vm8, %v2249_v25, %v2189_v29 }
 0x233   : > { %v2229_v42 = vpop.permute.xlu0 %2228 }
 0x234   : > { %v2268_v1 = vsel %vm498_vm9, %v2266_v60, %v2229_v42 }
 0x235   : > { %v2465_v39 = vpop.permute.xlu1 %2464 }
 0x236   : > { %v2527_v13 = vsel %vm495_vm8, %v2525_v24, %v2465_v39 }
 0x237   : > { %v2505_v36 = vpop.permute.xlu0 %2504 }
 0x238   : > { %v2544_v40 = vsel %vm498_vm9, %v2542_v5, %v2505_v36 }
 0x239   : > { %v2736_v56 = vpop.permute.xlu1 %2735 }
 0x23b   : > { %v2776_v17 = vpop.permute.xlu0 %2775 }
 0x23d   : > { %v2194_v8 = vpop.permute.xlu1 %2193 }
 0x23e   : > { %v2253_v41 = vsel %vm498_vm9, %v2251_v49, %v2194_v8  ;;  %v6125_v8 = vld [vmem:[#allocation41_spill] sm:$0xff] }
 0x23f   : > { %v2234_v53 = vpop.permute.xlu0 %2233 }
 0x240   : > { %v2270_v27 = vsel %vm501_vm10, %v2268_v1, %v2234_v53 }
 0x241   : > { %v2470_v4 = vpop.permute.xlu1 %2469 }
 0x242   : > { %v2529_v38 = vsel %vm498_vm9, %v2527_v13, %v2470_v4 }
 0x243   : > { %v2510_v30 = vpop.permute.xlu0 %2509 }
 0x244   : > { %v2546_v50 = vsel %vm501_vm10, %v2544_v40, %v2510_v30  ;;  %v2799_v30 = vsel %vm488_vm6, %v5465_v14, %v2731_v11 }
 0x245   : > { %v2741_v55 = vpop.permute.xlu1 %2740 }
 0x247   : > { %v2781_v46 = vpop.permute.xlu0 %2780 }
 0x249   : > { %v2199_v23 = vpop.permute.xlu1 %2198 }
 0x24a   : > { %v2255_v33 = vsel %vm501_vm10, %v2253_v41, %v2199_v23 }
 0x24b   : > { %v2239_v12 = vpop.permute.xlu0 %2238 }
 0x24c   : > { %v2272_v28 = vsel %vm504_vm11, %v2270_v27, %v2239_v12 }
 0x24d   : > { %v2475_v51 = vpop.permute.xlu1 %2474 }
 0x24e   : > { %v2531_v35 = vsel %vm501_vm10, %v2529_v38, %v2475_v51 }
 0x24f   : > { %v2515_v58 = vpop.permute.xlu0 %2514 }
 0x250   : > { %v2548_v34 = vsel %vm504_vm11, %v2546_v50, %v2515_v58  ;;  %v2801_v58 = vsel %vm492_vm7, %v2799_v30, %v2736_v56 }
 0x251   : > { %v2746_v44 = vpop.permute.xlu1 %2745  ;;  %v2803_v51 = vsel %vm495_vm8, %v2801_v58, %v2741_v55 }
 0x252   : > { %v2805_v11 = vsel %vm498_vm9, %v2803_v51, %v2746_v44 }
 0x253   : > { %v2786_v19 = vpop.permute.xlu0 %2785 }
 0x255   : > { %v2204_v63 = vpop.permute.xlu1 %2203 }
 0x256   : > { %v2257_v29 = vsel %vm504_vm11, %v2255_v33, %v2204_v63 }
 0x257   : > { %v2244_v61 = vpop.permute.xlu0 %2243 }
 0x258   : > { %v2274_v62 = vsel %vm507_vm12, %v2272_v28, %v2244_v61 }
 0x259   : > { %v2480_v48 = vpop.permute.xlu1 %2479  ;;  %v2986_v59 = vrot.slane %v2274_v62, 4  ;;  %v3077_v62 = vld [vmem:[#allocation5 + $0xc] sm:$0xf] }
 0x25a   : > { %v2533_v23 = vsel %vm504_vm11, %v2531_v35, %v2480_v48 }
 0x25b   : > { %v2520_v31 = vpop.permute.xlu0 %2519  ;;  %v2998_v32 = vsel %vm2844_vm14, %v5758_v20, %v2986_v59  ;;  %v2814_v20 = vsel %vm488_vm6, %v6125_v8, %v5827_v43 }
 0x25c   : > { %v2550_v21 = vsel %vm507_vm12, %v2548_v34, %v2520_v31  ;;  %v2816_v39 = vsel %vm492_vm7, %v2814_v20, %v2771_v15 }
 0x25d   : > { %v2751_v0 = vpop.permute.xlu1 %2750  ;;  %v2990_v26 = vrot.slane %v2550_v21, 2  ;;  %v2818_v4 = vsel %vm495_vm8, %v2816_v39, %v2776_v17  ;;  %v3057_v60 = vrot.slane %v2550_v21, 4 }
 0x25e   : > { %v2820_v45 = vsel %vm498_vm9, %v2818_v4, %v2781_v46  ;;  %v2807_v56 = vsel %vm501_vm10, %v2805_v11, %v2751_v0 }
 0x25f   : > { %v2791_v57 = vpop.permute.xlu0 %2790  ;;  %v3003_v3 = vsel %vm2849_vm15, %v2998_v32, %v2990_v26  ;;  %v2822_v15 = vsel %vm501_vm10, %v2820_v45, %v2786_v19  ;;  %v3069_v6 = vsel %vm2844_vm14, %v5813_v10, %v3057_v60 }
 0x260   : > { %3010 = vmatprep.subr.bf16.mxu0 %v3003_v3  ;;  %v2824_v17 = vsel %vm504_vm11, %v2822_v15, %v2791_v57 }
 0x261   : > { %v2209_v42 = vpop.permute.xlu1 %2208 }
 0x262   : > { %v2259_v36 = vsel %vm507_vm12, %v2257_v29, %v2209_v42 }
 0x263   : > { %v2985_v53 = vrot.slane %v2259_v36, 4  ;;  %v2485_v12 = vpop.permute.xlu0 %2484 }
 0x264   : > { %v2535_v52 = vsel %vm507_vm12, %v2533_v23, %v2485_v12 }
 0x265   : > { %v2756_v7 = vpop.permute.xlu1 %2755  ;;  %v2996_v43 = vsel %vm2844_vm14, %v5794_v22, %v2985_v53  ;;  %v2989_v14 = vrot.slane %v2535_v52, 2  ;;  %v3056_v63 = vrot.slane %v2535_v52, 4 }
 0x266   : > { %v2809_v22 = vsel %vm504_vm11, %v2807_v56, %v2756_v7 }
 0x267   : > { %v2796_v1 = vpop.permute.xlu0 %2795  ;;  %v3000_v37 = vsel %vm2849_vm15, %v2996_v43, %v2989_v14  ;;  %v3067_v61 = vsel %vm2844_vm14, %v5820_v16, %v3056_v63 }
 0x268   : > { %v2826_v55 = vsel %vm507_vm12, %v2824_v17, %v2796_v1  ;;  %3011 = vmatpush1.bf16.msra.mxu0 %v3000_v37 }
 0x269   : > { %v2761_v46 = vpop.permute.xlu1 %2760  ;;  %v3061_v44 = vrot.slane %v2826_v55, 2 }
 0x26a   : > { %v2811_v19 = vsel %vm507_vm12, %v2809_v22, %v2761_v46 }
 0x26b   : > { %v3060_v27 = vrot.slane %v2811_v19, 2  ;;  %v3074_v28 = vsel %vm2849_vm15, %v3069_v6, %v3061_v44  ;;  %3393 = vmatmul.mubr.msk.bf16.vlgmr.msra.gmra.mrb[4].mxu0 %vm488_vm6, %v3006_v9 }
 0x26c   : > { %3081 = vmatprep.subr.bf16.mxu1 %v3074_v28 }
 0x26d   : > { %v3071_v5 = vsel %vm2849_vm15, %v3067_v61, %v3060_v27 }
 0x26e   : > { %3082 = vmatpush1.bf16.msra.mxu1 %v3071_v5 }
 0x271   : > { %3396 = vmatmul.mubr.msk.bf16.vlgmr.msra.gmra.mrb[4].mxu1 %vm488_vm6, %v3077_v62 }
 0x278   : > { %v2860_v48 = vpop.permute.xlu0 %2859 }
 0x2ee   : > { %v2899_v40 = vpop.f32.mrb[0].mxu0 }
 0x2ef   : > { %v2901_v59 = vpop.f32.mrb[1].mxu0  ;;  %v2900_v10 = vadd.f32 %v2899_v40, %v2860_v48 }
 0x2f0   : > { %v2971_v50 = vpop.f32.mrb[0].mxu1  ;;  %v2903_v54 = vpop.f32.mrb[2].mxu0  ;;  %v2902_v34 = vadd.f32 %v2901_v59, %v2860_v48 }
 0x2f1   : > { %v2973_v18 = vpop.f32.mrb[1].mxu1  ;;  %v2972_v31 = vadd.f32 %v2971_v50, %v2860_v48  ;;  %v2904_v25 = vpop.f32.mrb[3].mxu0  ;;  %2906 = vst [vmem:[%s243_s26] sm:$0xff] %v2900_v10 }
 0x2f2   : > { %v2975_v16 = vpop.f32.mrb[2].mxu1  ;;  %v2974_v21 = vadd.f32 %v2973_v18, %v2860_v48  ;;  %2907 = vst [vmem:[%s243_s26 + $0x8] sm:$0xff] %v2902_v34 }
 0x2f3   : > { %v2976_v0 = vpop.f32.mrb[3].mxu1  ;;  %3391 = vst [vmem:[%s243_s26 + $0x10] sm:$0xff] %v2972_v31 }
 0x2f4   : > { %3392 = vst [vmem:[%s243_s26 + $0x18] sm:$0xff] %v2974_v21 }
 0x33e   : > { %v3044_v49 = vpop.f32.mrb[4].mxu0 }
 0x33f   : > { %v3045_v26 = vadd.f32 %v3044_v49, %v2860_v48  ;;  %v3046_v47 = vpop.f32.mrb[5].mxu0 }
 0x340   : > { %v3047_v2 = vadd.f32 %v3046_v47, %v2860_v48  ;;  %v3048_v41 = vpop.f32.mrb[6].mxu0 }
 0x341   : > { %3394 = vst [vmem:[%s243_s26 + $0x20] sm:$0xff] %v3045_v26  ;;  %v3049_v32 = vpop.f32.mrb[7].mxu0 }
 0x342   : > { %3395 = vst [vmem:[%s243_s26 + $0x28] sm:$0xff] %v3047_v2 }
 0x344   : > { %v3115_v24 = vpop.f32.mrb[4].mxu1 }
 0x345   : > { %v3116_v33 = vadd.f32 %v3115_v24, %v2860_v48  ;;  %v3117_v57 = vpop.f32.mrb[5].mxu1 }
 0x346   : > { %v3118_v3 = vadd.f32 %v3117_v57, %v2860_v48  ;;  %v3119_v13 = vpop.f32.mrb[6].mxu1 }
 0x347   : > { %3397 = vst [vmem:[%s243_s26 + $0x30] sm:$0xff] %v3116_v33  ;;  %v3120_v29 = vpop.f32.mrb[7].mxu1 }
 0x348   : > { %3398 = vst [vmem:[%s243_s26 + $0x38] sm:$0xff] %v3118_v3 }
 0x349   : > { %3678 = shalt.err (!%p3675_p2)
}
 0x34a   : > { %s3679_s4 = scalar_lea.hbm %s5897_s21, 1024  ;;  %s3683_s10 = scalar_lea.hbm %s5952_s3, 2048 }
 0x34b   : > { %p3680_p0 = scmp.ne.s32.totalorder %s5897_s21, %s3679_s4  ;;  %p3684_p6 = scmp.lt.u32.totalorder %s5897_s21, %s5952_s3 }
 0x34c   : > { %p3685_p7 = scmp.lt.u32.totalorder %s3683_s10, %s3679_s4  ;;  %p3687_p8 = scmp.lt.u32.totalorder %s3679_s4, %s5897_s21 }
 0x34d   : > { %p3681_p4 = pnand %p3680_p0, %p6126_p12 }
 0x34e   : > { %p3686_p11 = por %p3685_p7, %p3684_p6 }
 0x34f   : > { %p3682_p13 = pneg %p3681_p4 }
 0x350   : > { %p3688_p1 = por %p3687_p8, %p3686_p11 }
 0x352   : > { %p3689_p10 = pnand %p3688_p1, %p3682_p13 }
 0x354   : > { %3692 = shalt.err (!%p3689_p10)
}
 0x355   : > { %s3771_s25 = smov 256  }
 0x356   : > { %3490 = dma.vmem_to_hbm [thread:$0]  (%p6126_p12), %s5899_s29, 1024, %s5897_s21, %s3126_s15, %s3771_s25, %s3771_s25, %s3762_s24  }
 0x357 PF: > { %s3156_s6 = sand.u32 1, %s3731_s12   ;;  %p6127_p3 = scmp.ne.s32.totalorder %s5993_s23, 0 }
 0x358   : > { %p6128_p5 = scmp.ge.s32.totalorder %s3751_s17, 2  ;;  %s3157_s7 = scalar_lea.sflag [#allocation4], %s3156_s6 }
 0x35a   : > { %p3504_p9 = pnand %p6128_p5, %p6127_p3 }
 0x35c   : > { %3726 = dma.done.wait (!%p3504_p9), %s3157_s7, 1024  }
 0x35d   : > { %3728 = vsyncadd (!%p3504_p9), %s3157_s7, 4294966272  ;;  %s20_s17 = sadd.s32 1, %s3751_s17   ;;  %s6129_s12 = smov %s3735_s13 }
 0x35e   : > { %p17_p2 = scmp.ge.s32.totalorder %s20_s17, 4   ;;  %s6130_s13 = smov %s3739_s14 }
 0x35f   : > { %s6131_s14 = smov %s3940_s5  ;;  %s6132_s15 = smov %s3747_s16 }
 0x360   : > { %s6133_s16 = smov %s6135_s19  ;;  %19 = sbr.rel (!%p17_p2) target bundleno = 7 (0x7), region = 93 }
 0x367   :  { %3162 = vsyncpa [#allocation3], 1 }
 0x368   :  { %3164 = vsyncpa [#allocation3 + $0x1], 1 }
 0x369   :  { %3165 = vsyncpa [#allocation6], 1 }
 0x36a   :  { %3166 = vsyncpa [#allocation4], 1 }
 0x36b   :  { %3168 = vsyncpa [#allocation4 + $0x1], 1 }

</bundles_post_ra>
